<compile_context>
chip_gen: v7x
topology: tpu7x:2x2x1
jax: 0.10.0
libtpu: 0.0.40
codegen_flags: <defaults>
</compile_context>

<pallas_src>
import jax
import jax.numpy as jnp
from jax.experimental import pallas as pl
from jax.experimental.pallas import tpu as pltpu

_SQRT_HALF = 0.7071067811865476
_IN_EPS = 1e-5


# ----------------------------------------------------------------------------
# Hardware probe (conservative fallbacks; wrapped so it can never crash).
# ----------------------------------------------------------------------------
def _tpu_hw_params():
    """Returns (mxu_k, vmem_capacity_bytes, two_tensorcores)."""
    mxu_k, cap, two_tc = 128, 64 << 20, False
    try:
        cap = int(pltpu.get_tpu_info().vmem_capacity_bytes)
    except Exception:
        pass
    try:
        kind = jax.devices()[0].device_kind.lower()
        if not any(tag in kind for tag in ("v2", "v3", "v4", "v5")):
            mxu_k = 256  # v6e / v7x have a 256-wide MXU K dimension
        two_tc = any(tag in kind for tag in ("v4", "v5p", "v7"))
    except Exception:
        pass
    return mxu_k, cap, two_tc


# ----------------------------------------------------------------------------
# Tiling selection.
#   d  = (batch, token) samples per grid step        (sets DMA tile size)
#   d0 = samples per kron/block-diagonal sub-block   (sets MXU K pass size)
# ----------------------------------------------------------------------------
def _choose_sub_block(d, c_in, c_lift, c_out, mxu_k):
    """Largest divisor of d whose kron-expanded matmuls stay within one MXU K
    pass (d0 * max(c_in, c_lift) <= mxu_k), preferring 8-row-aligned slabs."""
    cap = max(1, mxu_k // max(c_in, c_lift))
    cands = [s for s in range(1, d + 1) if d % s == 0 and s <= cap]
    aligned = [s for s in cands
               if (s * c_in) % 8 == 0 and (s * c_lift) % 8 == 0
               and (s * c_out) % 8 == 0]
    return max(aligned) if aligned else max(cands)


def _footprint_bytes(d, d0, c_in, c_lift, c_out, hw, in_itemsize, out_itemsize):
    # double-buffered input/output tiles
    tiles = 2 * d * c_in * hw * in_itemsize + 2 * d * c_out * hw * out_itemsize
    # ~4-5 live f32 temporaries per sub-block inside the kernel
    live = 5 * d0 * max(c_lift, c_out) * hw * 4
    # expanded (kron) weights + tiled affine/bias vectors (single copy)
    kron = 4 * (d0 * max(c_in, c_lift, c_out)) ** 2 * 4 + 6 * d0 * c_lift * 4
    return tiles + live + kron


def _choose_block_bg(bg, c_in, c_lift, c_out, hw, in_itemsize, out_itemsize,
                     mxu_k, vmem_budget, max_sub=8, prefer_even_grid=False):
    def aligned(d):
        return d == bg or ((d * c_in) % 8 == 0 and (d * c_out) % 8 == 0)

    divs = [d for d in range(1, bg + 1) if bg % d == 0]
    good = []
    for d in divs:
        if not aligned(d):
            continue
        d0 = _choose_sub_block(d, c_in, c_lift, c_out, mxu_k)
        if d // d0 > max_sub:
            continue
        if _footprint_bytes(d, d0, c_in, c_lift, c_out, hw,
                            in_itemsize, out_itemsize) <= vmem_budget:
            good.append(d)
    if not good:
        # Never silently take the whole problem: fall back to the smallest
        # aligned divisor (may still be big for degenerate shapes, but bounded).
        return min(d for d in divs if aligned(d))
    if prefer_even_grid:
        even = [d for d in good if (bg // d) % 2 == 0]
        if even:
            return max(even)
    return max(good)


# ----------------------------------------------------------------------------
# Fused kernel: lifting-fc1 -> IN -> GELU -> (W1P@W2L) -> IN -> GELU ->
# projection-fc2 (+bias), applied to n_sub block-diagonal sub-blocks of the
# grid-step tile.  Rows are sample-major / channel-minor; the shared per-token
# 1x1-conv weights were expanded to block-diagonal (kron) form on the host so
# every matmul is a plain 2-D MXU matmul while InstanceNorm stays exactly
# per-(sample, channel)-row (PyTorch InstanceNorm2d semantics).
# ----------------------------------------------------------------------------
def _make_codano_kernel(n_sub, rows_in, rows_out):
    def kernel(x_ref, w1_ref, gl_ref, bl_ref, wc_ref, gp_ref, bp_ref,
               w2_ref, b2_ref, o_ref):
        # Hoist the grid-invariant weight loads out of the sub-block loop.
        w1 = w1_ref[...]
        wc = wc_ref[...]
        w2 = w2_ref[...]
        gl = gl_ref[...]
        bl = bl_ref[...]
        gp = gp_ref[...]
        bp = bp_ref[...]
        b2 = b2_ref[...]

        def inorm_affine(h, gamma, beta):
            # InstanceNorm2d(affine=True, eps=1e-5): two-pass statistics
            # (robust to the E[x^2]-E[x]^2 cancellation), affine folded into
            # one scale/shift pass.
            inv_hw = 1.0 / h.shape[-1]
            mean = jnp.sum(h, axis=-1, keepdims=True) * inv_hw
            centered = h - mean
            var = jnp.sum(centered * centered, axis=-1, keepdims=True) * inv_hw
            return centered * (gamma * jax.lax.rsqrt(var + _IN_EPS)) + beta

        def gelu(h):
            # exact erf form == torch.nn.functional.gelu default
            return 0.5 * h * (1.0 + jax.lax.erf(h * _SQRT_HALF))

        for s in range(n_sub):  # static unroll; the tiler keeps n_sub small
            xs = x_ref[s * rows_in:(s + 1) * rows_in, :].astype(jnp.float32)
            # lifting fc1 (its bias is cancelled by the InstanceNorm below)
            h = jnp.dot(w1, xs, preferred_element_type=jnp.float32)
            h = gelu(inorm_affine(h, gl, bl))
            # collapsed lifting-fc2 @ projection-fc1 (operator blocks identity;
            # the constants W1P@b2l + b1p are cancelled by this InstanceNorm)
            h = jnp.dot(wc, h, preferred_element_type=jnp.float32)
            h = gelu(inorm_affine(h, gp, bp))
            # projection fc2
            y = jnp.dot(w2, h, preferred_element_type=jnp.float32) + b2
            o_ref[s * rows_out:(s + 1) * rows_out, :] = y.astype(o_ref.dtype)

    return kernel


# ----------------------------------------------------------------------------
# Builder: one-time weight collapse/expansion + a jitted forward callable.
# ----------------------------------------------------------------------------
def make_codano_forward(lifting_params, projection_params, *,
                        input_token_codim, hidden_token_codim, x_shape,
                        x_dtype=jnp.float32, domain_padding=0.5,
                        io_dtype=None, block_bg=None, sub_bg=None):
    # TODO(synk): CodanoBlockND operator blocks (codomain attention +
    # SpectralConvKernel2d), DomainPadding, and the optional cls token are not
    # part of the provided reference source; they are treated as identity /
    # disabled here, which also makes the one-sided pad/unpad pair a no-op.
    del domain_padding

    w1l, _b1l, gl, bl, w2l, b2l = lifting_params
    w1p, _b1p, gp, bp, w2p, b2p = projection_params

    B, GC, H, W = x_shape
    c_in = int(input_token_codim)
    c_lift = int(w1l.shape[0])
    c_hid = int(w2l.shape[0])
    c_out = int(w2p.shape[0])
    assert GC % c_in == 0, "channels not divisible by token codim"
    assert c_hid == hidden_token_codim == w1p.shape[1]
    G = GC // c_in
    BG, HW = B * G, H * W

    io_dt = jnp.dtype(io_dtype) if io_dtype is not None else jnp.dtype(x_dtype)

    mxu_k, vmem_cap, two_tc = _tpu_hw_params()
    vmem_budget = min(max(vmem_cap // 4, 8 << 20), 24 << 20)

    d = int(block_bg) if block_bg is not None else _choose_block_bg(
        BG, c_in, c_lift, c_out, HW, io_dt.itemsize, io_dt.itemsize,
        mxu_k, vmem_budget, prefer_even_grid=two_tc)
    assert BG % d == 0, (BG, d)
    d0 = int(sub_bg) if sub_bg is not None else _choose_sub_block(
        d, c_in, c_lift, c_out, mxu_k)
    assert d % d0 == 0, (d, d0)
    n_sub = d // d0
    grid = BG // d

    # ----- one-time host-side weight preparation (outside the per-call path)
    f32 = jnp.float32
    # Collapse lifting-fc2 and projection-fc1 (valid with identity blocks).
    wc = jnp.dot(w1p.astype(f32), w2l.astype(f32))          # (c_lift, c_lift)
    eye = jnp.eye(d0, dtype=f32)
    bd = lambda w: jnp.kron(eye, w.astype(f32))              # block-diagonal
    tile = lambda v: jnp.tile(v.astype(f32).reshape(-1, 1), (d0, 1))
    # Dropped entirely: b1l, b2l, b1p (per-channel constants cancelled by the
    # InstanceNorm mean subtraction that follows them).
    weights = (bd(w1l), tile(gl), tile(bl),
               bd(wc), tile(gp), tile(bp),
               bd(w2p), tile(b2p))

    rows_in, rows_out = d0 * c_in, d0 * c_out
    kernel = _make_codano_kernel(n_sub, rows_in, rows_out)

    # Advisory cost estimate so XLA can schedule around the custom call.
    flops = 2 * BG * HW * (c_lift * c_in + c_lift * c_lift + c_out * c_lift)
    transc = 2 * BG * c_lift * HW
    bytes_accessed = (BG * c_in * HW * io_dt.itemsize
                      + BG * c_out * HW * io_dt.itemsize
                      + sum(int(w.size) * 4 for w in weights))
    cost = pl.CostEstimate(flops=int(flops), transcendentals=int(transc),
                           bytes_accessed=int(bytes_accessed))

    fp = _footprint_bytes(d, d0, c_in, c_lift, c_out, HW,
                          io_dt.itemsize, io_dt.itemsize)
    vmem_limit = int(min(vmem_cap, max(32 << 20, 2 * fp)))

    call = pl.pallas_call(
        kernel,
        out_shape=jax.ShapeDtypeStruct((BG * c_out, HW), io_dt),
        grid_spec=pltpu.PrefetchScalarGridSpec(
            num_scalar_prefetch=0,
            grid=(grid,),
            in_specs=[pl.BlockSpec((d * c_in, HW), lambda i: (i, 0))]
                     + [pl.BlockSpec(w.shape, lambda i: (0, 0))
                        for w in weights],
            out_specs=pl.BlockSpec((d * c_out, HW), lambda i: (i, 0)),
        ),
        compiler_params=pltpu.CompilerParams(
            dimension_semantics=("parallel",),
            vmem_limit_bytes=vmem_limit),
        cost_estimate=cost,
    )

    @jax.jit
    def forward(x):
        # 'b (g c) h w -> ((b g) c) (h w)' -- a pure reshape, no copy.
        xr = x.reshape(BG * c_in, HW).astype(io_dt)
        out = call(xr, *weights)
        # '((b g) c) (h w) -> b (g c) h w' -- a pure reshape, no copy.
        return out.reshape(B, G * c_out, H, W)

    return forward


def codano_forward(x, lifting_params, projection_params, *,
                   input_token_codim, hidden_token_codim, **kwargs):
    """One-shot convenience wrapper (prefer make_codano_forward + reuse)."""
    fwd = make_codano_forward(lifting_params, projection_params,
                              input_token_codim=input_token_codim,
                              hidden_token_codim=hidden_token_codim,
                              x_shape=x.shape, x_dtype=x.dtype, **kwargs)
    return fwd(x)


# ----------------------------------------------------------------------------
# Deterministic parameter init (PyTorch Conv2d-style uniform bounds;
# InstanceNorm affine: weight=1, bias=0).  Biases b1 / b2 are created for
# parameter-set fidelity; the mathematically-redundant ones are dropped at
# build time (cancelled by the InstanceNorm that follows them).
# ----------------------------------------------------------------------------
def init_perm_eq_proj(key, c_in, c_hid, c_out):
    k1, k2, k3, k4 = jax.random.split(key, 4)
    bound1 = 1.0 / float(jnp.sqrt(float(c_in)))
    bound2 = 1.0 / float(jnp.sqrt(float(c_hid)))
    w1 = jax.random.uniform(k1, (c_hid, c_in), jnp.float32, -bound1, bound1)
    b1 = jax.random.uniform(k2, (c_hid, 1), jnp.float32, -bound1, bound1)
    gamma = jnp.ones((c_hid, 1), jnp.float32)
    beta = jnp.zeros((c_hid, 1), jnp.float32)
    w2 = jax.random.uniform(k3, (c_out, c_hid), jnp.float32, -bound2, bound2)
    b2 = jax.random.uniform(k4, (c_out, 1), jnp.float32, -bound2, bound2)
    return (w1, b1, gamma, beta, w2, b2)


# ----------------------------------------------------------------------------
# Pure-JAX reference (mirrors the PyTorch module verbatim: all biases kept,
# one-sided DomainPadding pad/unpad kept, identity operator blocks) used to
# validate the fused/collapsed Pallas path.
# ----------------------------------------------------------------------------
def _reference_forward(x, lifting_params, projection_params,
                       input_token_codim, hidden_token_codim,
                       domain_padding=0.5):
    def perm_eq(x, params, c_in):
        w1, b1, gamma, beta, w2, b2 = params
        B, GC, H, W = x.shape
        G = GC // c_in
        xr = x.reshape(B * G, c_in, H * W)
        h = jnp.einsum('hc,bcs->bhs', w1, xr) + b1[None]
        mean = h.mean(-1, keepdims=True)
        var = ((h - mean) ** 2).mean(-1, keepdims=True)
        h = (h - mean) * jax.lax.rsqrt(var + _IN_EPS) * gamma[None] + beta[None]
        h = 0.5 * h * (1.0 + jax.lax.erf(h * _SQRT_HALF))
        y = jnp.einsum('oc,bcs->bos', w2, h) + b2[None]
        return y.reshape(B, G * w2.shape[0], H, W)

    x = perm_eq(x, lifting_params, input_token_codim)
    H, W = x.shape[-2:]
    ph, pw = round(domain_padding * H), round(domain_padding * W)
    x = jnp.pad(x, ((0, 0), (0, 0), (0, ph), (0, pw)))
    # identity operator blocks
    x = x[..., :H, :W]
    return perm_eq(x, projection_params, hidden_token_codim)


if __name__ == "__main__":
    # Small CodANO configuration
    B = 2
    INPUT_TOKEN_CODIM = 4      # channels per input token
    HIDDEN_TOKEN_CODIM = 8
    LIFTING_TOKEN_CODIM = 8
    OUTPUT_TOKEN_CODIM = 4
    N_VARIABLES = 4            # number of tokens / variables (G)
    H = W = 16

    key = jax.random.PRNGKey(0)
    kx, kl, kp = jax.random.split(key, 3)

    # input: (B, G * input_token_codim, H, W)  -- NCHW, same as PyTorch
    x = jax.random.normal(kx, (B, N_VARIABLES * INPUT_TOKEN_CODIM, H, W),
                          dtype=jnp.float32)

    lifting_params = init_perm_eq_proj(
        kl, INPUT_TOKEN_CODIM, LIFTING_TOKEN_CODIM, HIDDEN_TOKEN_CODIM)
    projection_params = init_perm_eq_proj(
        kp, HIDDEN_TOKEN_CODIM, LIFTING_TOKEN_CODIM, OUTPUT_TOKEN_CODIM)

    expected_shape = (B, N_VARIABLES * OUTPUT_TOKEN_CODIM, H, W)
    y_ref = _reference_forward(x, lifting_params, projection_params,
                               input_token_codim=INPUT_TOKEN_CODIM,
                               hidden_token_codim=HIDDEN_TOKEN_CODIM)

    # (1) auto-tiled f32 path
    fwd = make_codano_forward(lifting_params, projection_params,
                              input_token_codim=INPUT_TOKEN_CODIM,
                              hidden_token_codim=HIDDEN_TOKEN_CODIM,
                              x_shape=x.shape)
    y = jax.block_until_ready(fwd(x))
    assert y.shape == expected_shape, (y.shape, expected_shape)
    assert bool(jnp.all(jnp.isfinite(y)))
    assert bool(jnp.allclose(y, y_ref, atol=1e-4, rtol=1e-4)), float(
        jnp.max(jnp.abs(y - y_ref)))

    # (2) forced multi-step / multi-sub-block schedule (grid=2, n_sub=2) to
    #     exercise the grid pipeline and the in-kernel sub-block loop
    fwd2 = make_codano_forward(lifting_params, projection_params,
                               input_token_codim=INPUT_TOKEN_CODIM,
                               hidden_token_codim=HIDDEN_TOKEN_CODIM,
                               x_shape=x.shape, block_bg=4, sub_bg=2)
    y2 = jax.block_until_ready(fwd2(x))
    assert bool(jnp.allclose(y2, y_ref, atol=1e-4, rtol=1e-4)), float(
        jnp.max(jnp.abs(y2 - y_ref)))

    # (3) bf16 I/O path (halves HBM traffic; compute stays f32 in VMEM)
    fwd_bf16 = make_codano_forward(lifting_params, projection_params,
                                   input_token_codim=INPUT_TOKEN_CODIM,
                                   hidden_token_codim=HIDDEN_TOKEN_CODIM,
                                   x_shape=x.shape, io_dtype=jnp.bfloat16)
    y3 = jax.block_until_ready(fwd_bf16(x))
    y3f = y3.astype(jnp.float32)
    assert y3.shape == expected_shape
    assert bool(jnp.all(jnp.isfinite(y3f)))
    assert float(jnp.max(jnp.abs(y3f - y_ref))) < 0.1

    print("KERNEL_OK")
</pallas_src>

<mosaic_0001>
module attributes {stable_mosaic.version = 11 : i64} {
  func.func @kernel(%arg0: i32, %arg1: memref<32x256xf32, #tpu.memory_space<vmem>>, %arg2: memref<64x32xf32, #tpu.memory_space<vmem>>, %arg3: memref<64x1xf32, #tpu.memory_space<vmem>>, %arg4: memref<64x1xf32, #tpu.memory_space<vmem>>, %arg5: memref<64x64xf32, #tpu.memory_space<vmem>>, %arg6: memref<64x1xf32, #tpu.memory_space<vmem>>, %arg7: memref<64x1xf32, #tpu.memory_space<vmem>>, %arg8: memref<32x64xf32, #tpu.memory_space<vmem>>, %arg9: memref<32x1xf32, #tpu.memory_space<vmem>>, %arg10: memref<32x256xf32, #tpu.memory_space<vmem>>) attributes {dimension_semantics = [#tpu.dimension_semantics<parallel>], iteration_bounds = array<i64: 1>, scalar_prefetch = 0 : i64, scratch_operands = 0 : i64, tpu.core_type = #tpu.core_type<tc>, window_params = [{transform_indices = @transform_0, window_bounds = array<i64: 32, 256>}, {pipeline_mode = #tpu.pipeline_mode<synchronous>, transform_indices = @transform_1, window_bounds = array<i64: 64, 32>}, {pipeline_mode = #tpu.pipeline_mode<synchronous>, transform_indices = @transform_2, window_bounds = array<i64: 64, 1>}, {pipeline_mode = #tpu.pipeline_mode<synchronous>, transform_indices = @transform_3, window_bounds = array<i64: 64, 1>}, {pipeline_mode = #tpu.pipeline_mode<synchronous>, transform_indices = @transform_4, window_bounds = array<i64: 64, 64>}, {pipeline_mode = #tpu.pipeline_mode<synchronous>, transform_indices = @transform_5, window_bounds = array<i64: 64, 1>}, {pipeline_mode = #tpu.pipeline_mode<synchronous>, transform_indices = @transform_6, window_bounds = array<i64: 64, 1>}, {pipeline_mode = #tpu.pipeline_mode<synchronous>, transform_indices = @transform_7, window_bounds = array<i64: 32, 64>}, {pipeline_mode = #tpu.pipeline_mode<synchronous>, transform_indices = @transform_8, window_bounds = array<i64: 32, 1>}, {transform_indices = @transform_9, window_bounds = array<i64: 32, 256>}]} {
    %c0 = arith.constant 0 : index
    %c0_0 = arith.constant 0 : index
    %0 = vector.load %arg2[%c0, %c0_0] : memref<64x32xf32, #tpu.memory_space<vmem>>, vector<64x32xf32>
    %c0_1 = arith.constant 0 : index
    %c0_2 = arith.constant 0 : index
    %1 = vector.load %arg5[%c0_1, %c0_2] : memref<64x64xf32, #tpu.memory_space<vmem>>, vector<64x64xf32>
    %c0_3 = arith.constant 0 : index
    %c0_4 = arith.constant 0 : index
    %2 = vector.load %arg8[%c0_3, %c0_4] : memref<32x64xf32, #tpu.memory_space<vmem>>, vector<32x64xf32>
    %c0_5 = arith.constant 0 : index
    %c0_6 = arith.constant 0 : index
    %3 = vector.load %arg3[%c0_5, %c0_6] : memref<64x1xf32, #tpu.memory_space<vmem>>, vector<64x1xf32>
    %c0_7 = arith.constant 0 : index
    %c0_8 = arith.constant 0 : index
    %4 = vector.load %arg4[%c0_7, %c0_8] : memref<64x1xf32, #tpu.memory_space<vmem>>, vector<64x1xf32>
    %c0_9 = arith.constant 0 : index
    %c0_10 = arith.constant 0 : index
    %5 = vector.load %arg6[%c0_9, %c0_10] : memref<64x1xf32, #tpu.memory_space<vmem>>, vector<64x1xf32>
    %c0_11 = arith.constant 0 : index
    %c0_12 = arith.constant 0 : index
    %6 = vector.load %arg7[%c0_11, %c0_12] : memref<64x1xf32, #tpu.memory_space<vmem>>, vector<64x1xf32>
    %c0_13 = arith.constant 0 : index
    %c0_14 = arith.constant 0 : index
    %7 = vector.load %arg9[%c0_13, %c0_14] : memref<32x1xf32, #tpu.memory_space<vmem>>, vector<32x1xf32>
    %c0_15 = arith.constant 0 : index
    %c0_16 = arith.constant 0 : index
    %8 = vector.load %arg1[%c0_15, %c0_16] : memref<32x256xf32, #tpu.memory_space<vmem>>, vector<32x256xf32>
    %cst = arith.constant dense<0.000000e+00> : vector<64x256xf32>
    %9 = tpu.matmul %0, %8, %cst {dimension_numbers = #tpu.dot_dimension_numbers<[1], [0], [0], [1], [0, 0, 1, 1], [], []>} : vector<64x32xf32>, vector<32x256xf32>, vector<64x256xf32> -> vector<64x256xf32>
    %cst_17 = arith.constant dense<0.000000e+00> : vector<64xf32>
    %10 = vector.multi_reduction <add>, %9, %cst_17 [1] : vector<64x256xf32> to vector<64xf32>
    %11 = vector.shape_cast %10 : vector<64xf32> to vector<64x1xf32>
    %cst_18 = arith.constant 3.906250e-03 : f32
    %12 = vector.broadcast %cst_18 : f32 to vector<64x1xf32>
    %13 = arith.mulf %11, %12 : vector<64x1xf32>
    %14 = vector.broadcast %13 : vector<64x1xf32> to vector<64x256xf32>
    %15 = arith.subf %9, %14 : vector<64x256xf32>
    %16 = arith.mulf %15, %15 : vector<64x256xf32>
    %cst_19 = arith.constant dense<0.000000e+00> : vector<64xf32>
    %17 = vector.multi_reduction <add>, %16, %cst_19 [1] : vector<64x256xf32> to vector<64xf32>
    %18 = vector.shape_cast %17 : vector<64xf32> to vector<64x1xf32>
    %cst_20 = arith.constant 3.906250e-03 : f32
    %19 = vector.broadcast %cst_20 : f32 to vector<64x1xf32>
    %20 = arith.mulf %18, %19 : vector<64x1xf32>
    %cst_21 = arith.constant 9.99999974E-6 : f32
    %21 = vector.broadcast %cst_21 : f32 to vector<64x1xf32>
    %22 = arith.addf %20, %21 : vector<64x1xf32>
    %23 = math.rsqrt %22 : vector<64x1xf32>
    %24 = arith.mulf %3, %23 : vector<64x1xf32>
    %25 = vector.broadcast %24 : vector<64x1xf32> to vector<64x256xf32>
    %26 = arith.mulf %15, %25 : vector<64x256xf32>
    %27 = vector.broadcast %4 : vector<64x1xf32> to vector<64x256xf32>
    %28 = arith.addf %26, %27 : vector<64x256xf32>
    %cst_22 = arith.constant 5.000000e-01 : f32
    %29 = vector.broadcast %cst_22 : f32 to vector<64x256xf32>
    %30 = arith.mulf %29, %28 : vector<64x256xf32>
    %cst_23 = arith.constant 0.707106769 : f32
    %31 = vector.broadcast %cst_23 : f32 to vector<64x256xf32>
    %32 = arith.mulf %28, %31 : vector<64x256xf32>
    %33 = math.erf %32 : vector<64x256xf32>
    %cst_24 = arith.constant 1.000000e+00 : f32
    %34 = vector.broadcast %cst_24 : f32 to vector<64x256xf32>
    %35 = arith.addf %34, %33 : vector<64x256xf32>
    %36 = arith.mulf %30, %35 : vector<64x256xf32>
    %cst_25 = arith.constant dense<0.000000e+00> : vector<64x256xf32>
    %37 = tpu.matmul %1, %36, %cst_25 {dimension_numbers = #tpu.dot_dimension_numbers<[1], [0], [0], [1], [0, 0, 1, 1], [], []>} : vector<64x64xf32>, vector<64x256xf32>, vector<64x256xf32> -> vector<64x256xf32>
    %cst_26 = arith.constant dense<0.000000e+00> : vector<64xf32>
    %38 = vector.multi_reduction <add>, %37, %cst_26 [1] : vector<64x256xf32> to vector<64xf32>
    %39 = vector.shape_cast %38 : vector<64xf32> to vector<64x1xf32>
    %cst_27 = arith.constant 3.906250e-03 : f32
    %40 = vector.broadcast %cst_27 : f32 to vector<64x1xf32>
    %41 = arith.mulf %39, %40 : vector<64x1xf32>
    %42 = vector.broadcast %41 : vector<64x1xf32> to vector<64x256xf32>
    %43 = arith.subf %37, %42 : vector<64x256xf32>
    %44 = arith.mulf %43, %43 : vector<64x256xf32>
    %cst_28 = arith.constant dense<0.000000e+00> : vector<64xf32>
    %45 = vector.multi_reduction <add>, %44, %cst_28 [1] : vector<64x256xf32> to vector<64xf32>
    %46 = vector.shape_cast %45 : vector<64xf32> to vector<64x1xf32>
    %cst_29 = arith.constant 3.906250e-03 : f32
    %47 = vector.broadcast %cst_29 : f32 to vector<64x1xf32>
    %48 = arith.mulf %46, %47 : vector<64x1xf32>
    %cst_30 = arith.constant 9.99999974E-6 : f32
    %49 = vector.broadcast %cst_30 : f32 to vector<64x1xf32>
    %50 = arith.addf %48, %49 : vector<64x1xf32>
    %51 = math.rsqrt %50 : vector<64x1xf32>
    %52 = arith.mulf %5, %51 : vector<64x1xf32>
    %53 = vector.broadcast %52 : vector<64x1xf32> to vector<64x256xf32>
    %54 = arith.mulf %43, %53 : vector<64x256xf32>
    %55 = vector.broadcast %6 : vector<64x1xf32> to vector<64x256xf32>
    %56 = arith.addf %54, %55 : vector<64x256xf32>
    %cst_31 = arith.constant 5.000000e-01 : f32
    %57 = vector.broadcast %cst_31 : f32 to vector<64x256xf32>
    %58 = arith.mulf %57, %56 : vector<64x256xf32>
    %cst_32 = arith.constant 0.707106769 : f32
    %59 = vector.broadcast %cst_32 : f32 to vector<64x256xf32>
    %60 = arith.mulf %56, %59 : vector<64x256xf32>
    %61 = math.erf %60 : vector<64x256xf32>
    %cst_33 = arith.constant 1.000000e+00 : f32
    %62 = vector.broadcast %cst_33 : f32 to vector<64x256xf32>
    %63 = arith.addf %62, %61 : vector<64x256xf32>
    %64 = arith.mulf %58, %63 : vector<64x256xf32>
    %cst_34 = arith.constant dense<0.000000e+00> : vector<32x256xf32>
    %65 = tpu.matmul %2, %64, %cst_34 {dimension_numbers = #tpu.dot_dimension_numbers<[1], [0], [0], [1], [0, 0, 1, 1], [], []>} : vector<32x64xf32>, vector<64x256xf32>, vector<32x256xf32> -> vector<32x256xf32>
    %66 = vector.broadcast %7 : vector<32x1xf32> to vector<32x256xf32>
    %67 = arith.addf %65, %66 : vector<32x256xf32>
    %c0_35 = arith.constant 0 : index
    %c0_36 = arith.constant 0 : index
    %68 = vector.load %arg10[%c0_35, %c0_36] : memref<32x256xf32, #tpu.memory_space<vmem>>, vector<32x256xf32>
    tpu.vector_store %arg10[%c0_35, %c0_36], %67 {strides = array<i32>} : memref<32x256xf32, #tpu.memory_space<vmem>>, vector<32x256xf32>,
    return
  }
  func.func @transform_0(%arg0: i32) -> (i32, i32) {
    %c0_i32 = arith.constant 0 : i32
    %c0_i32_0 = arith.constant 0 : i32
    return %arg0, %c0_i32 : i32, i32
  }
  func.func @transform_1(%arg0: i32) -> (i32, i32) {
    %c0_i32 = arith.constant 0 : i32
    %c0_i32_0 = arith.constant 0 : i32
    %c0_i32_1 = arith.constant 0 : i32
    return %c0_i32, %c0_i32_0 : i32, i32
  }
  func.func @transform_2(%arg0: i32) -> (i32, i32) {
    %c0_i32 = arith.constant 0 : i32
    %c0_i32_0 = arith.constant 0 : i32
    %c0_i32_1 = arith.constant 0 : i32
    return %c0_i32, %c0_i32_0 : i32, i32
  }
  func.func @transform_3(%arg0: i32) -> (i32, i32) {
    %c0_i32 = arith.constant 0 : i32
    %c0_i32_0 = arith.constant 0 : i32
    %c0_i32_1 = arith.constant 0 : i32
    return %c0_i32, %c0_i32_0 : i32, i32
  }
  func.func @transform_4(%arg0: i32) -> (i32, i32) {
    %c0_i32 = arith.constant 0 : i32
    %c0_i32_0 = arith.constant 0 : i32
    %c0_i32_1 = arith.constant 0 : i32
    return %c0_i32, %c0_i32_0 : i32, i32
  }
  func.func @transform_5(%arg0: i32) -> (i32, i32) {
    %c0_i32 = arith.constant 0 : i32
    %c0_i32_0 = arith.constant 0 : i32
    %c0_i32_1 = arith.constant 0 : i32
    return %c0_i32, %c0_i32_0 : i32, i32
  }
  func.func @transform_6(%arg0: i32) -> (i32, i32) {
    %c0_i32 = arith.constant 0 : i32
    %c0_i32_0 = arith.constant 0 : i32
    %c0_i32_1 = arith.constant 0 : i32
    return %c0_i32, %c0_i32_0 : i32, i32
  }
  func.func @transform_7(%arg0: i32) -> (i32, i32) {
    %c0_i32 = arith.constant 0 : i32
    %c0_i32_0 = arith.constant 0 : i32
    %c0_i32_1 = arith.constant 0 : i32
    return %c0_i32, %c0_i32_0 : i32, i32
  }
  func.func @transform_8(%arg0: i32) -> (i32, i32) {
    %c0_i32 = arith.constant 0 : i32
    %c0_i32_0 = arith.constant 0 : i32
    %c0_i32_1 = arith.constant 0 : i32
    return %c0_i32, %c0_i32_0 : i32, i32
  }
  func.func @transform_9(%arg0: i32) -> (i32, i32) {
    %c0_i32 = arith.constant 0 : i32
    %c0_i32_0 = arith.constant 0 : i32
    return %arg0, %c0_i32 : i32, i32
  }
}

</mosaic_0001>

<bundles_post_ra>
// kernel: forward.1
= control target key start
LH: loop header
LB: loop body
LE: loop exit
PB: predicated region body
PF: predicated region fallthrough
CT: control target
= control target key end

     0   :  { %v1297_v3 = vmov 0.0   ;;  %vm96_vm0 = vcmask 261120   ;;  %v1298_v45 = vmov 0   ;;  %vm546_vm1 = vcmask 523264   ;;  %s1829_s0 = inlined_call_operand.vmem [shape: f32[32,256], index: 0, kind: input, shape index: {}]   ;;  %s1830_s1 = inlined_call_operand.vmem [shape: f32[64,32], index: 1, kind: input, shape index: {}]   ;;  %s1831_s3 = inlined_call_operand.vmem [shape: f32[64,1], index: 3, kind: input, shape index: {}, may-alias: {3,6}]   ;;  %s1832_s2 = inlined_call_operand.vmem [shape: f32[64,1], index: 2, kind: input, shape index: {}, may-alias: {2,5}]   ;;  %s1833_s4 = inlined_call_operand.vmem [shape: f32[64,64], index: 4, kind: input, shape index: {}]   ;;  %s1834_s6 = inlined_call_operand.vmem [shape: f32[64,1], index: 6, kind: input, shape index: {}, may-alias: {3,6}]   ;;  %s1835_s5 = inlined_call_operand.vmem [shape: f32[64,1], index: 5, kind: input, shape index: {}, may-alias: {2,5}]   ;;  %s1836_s8 = inlined_call_operand.vmem [shape: f32[32,1], index: 8, kind: input, shape index: {}]   ;;  %s1837_s7 = inlined_call_operand.vmem [shape: f32[32,64], index: 7, kind: input, shape index: {}]   ;;  %s1838_s9 = inlined_call_operand.vmem [shape: f32[32,256], index: 9, kind: output, shape index: {}]  }
   0x1   :  { %v89_v0 = vld [vmem:[%s1829_s0 + $0x8] sm:$0xff]  ;;  %v91_v1 = vld [vmem:[%s1829_s0 + $0x18] sm:$0xff]  ;;  %v88_v2 = vld [vmem:[%s1829_s0] sm:$0xff]  ;;  %185 = vmatprep.mubr.f32.mxu0 %v1297_v3  ;;  %635 = vmatprep.mubr.f32.mxu1 %v1297_v3 }
   0x2   :  { %v1149_v4 = vpack.c.bf16 %v91_v1, %v89_v0  ;;  %v90_v5 = vld [vmem:[%s1829_s0 + $0x10] sm:$0xff]  ;;  %v93_v6 = vld [vmem:[%s1829_s0 + $0x28] sm:$0xff]  ;;  %v95_v7 = vld [vmem:[%s1829_s0 + $0x38] sm:$0xff]  ;;  %1199 = vset.pattern.permute.xlu1 %v1298_v45  ;;  %1200 = vset.pattern.permute.xlu0 %v1298_v45 }
   0x3   :  { %v1151_v8 = vpack.c.bf16 %v90_v5, %v88_v2  ;;  %v1153_v9 = vpack.c.bf16 %v95_v7, %v93_v6  ;;  %v92_v10 = vld [vmem:[%s1829_s0 + $0x20] sm:$0xff]  ;;  %v94_v11 = vld [vmem:[%s1829_s0 + $0x30] sm:$0xff]  ;;  %v33_v14 = vld [vmem:[%s1830_s1 + $0x8] sm:$0xff] }
   0x4   :  { %1150 = vmatprep.subr.bf16.mxu0 %v1149_v4  ;;  %v1155_v12 = vpack.c.bf16 %v94_v11, %v92_v10  ;;  %v32_v13 = vld [vmem:[%s1830_s1] sm:$0xff]  ;;  %v34_v15 = vld [vmem:[%s1830_s1 + $0x10] sm:$0xff]  ;;  %v35_v16 = vld [vmem:[%s1830_s1 + $0x18] sm:$0xff] }
   0x5   :  { %1152 = vmatpush1.bf16.msra.mxu0 %v1151_v8  ;;  %v36_v17 = vld [vmem:[%s1830_s1 + $0x20] sm:$0xff]  ;;  %v37_v18 = vld [vmem:[%s1830_s1 + $0x28] sm:$0xff]  ;;  %v38_v19 = vld [vmem:[%s1830_s1 + $0x30] sm:$0xff] }
   0x6   :  { %1154 = vmatprep.subr.bf16.mxu0 %v1153_v9  ;;  %v39_v20 = vld [vmem:[%s1830_s1 + $0x38] sm:$0xff] }
   0x9   :  { %1156 = vmatpush1.bf16.msra.mxu0 %v1155_v12 }
   0xc   :  { %1129 = vmatmul.mubr.msk.f32.vlgmr.msra.gmra.mrb[0].mxu0 %vm96_vm0, %v32_v13 }
   0xd   :  { %191 = vmatprep.mubr.f32.mxu0 %v1297_v3 }
  0x10   :  { %1130 = vmatmul.mubr.msk.f32.gmra.mrb[2].mxu0 %vm96_vm0, %v33_v14 }
  0x11   :  { %197 = vmatprep.mubr.f32.mxu0 %v1297_v3 }
  0x14   :  { %1131 = vmatmul.mubr.msk.f32.gmra.mrb[4].mxu0 %vm96_vm0, %v34_v15 }
  0x15   :  { %203 = vmatprep.mubr.f32.mxu0 %v1297_v3 }
  0x18   :  { %1132 = vmatmul.mubr.msk.f32.gmra.mrb[6].mxu0 %vm96_vm0, %v35_v16 }
  0x19   :  { %209 = vmatprep.mubr.f32.mxu0 %v1297_v3 }
  0x1c   :  { %1133 = vmatmul.mubr.msk.f32.gmra.mrb[8].mxu0 %vm96_vm0, %v36_v17 }
  0x1d   :  { %215 = vmatprep.mubr.f32.mxu0 %v1297_v3 }
  0x20   :  { %1134 = vmatmul.mubr.msk.f32.gmra.mrb[10].mxu0 %vm96_vm0, %v37_v18 }
  0x21   :  { %221 = vmatprep.mubr.f32.mxu0 %v1297_v3 }
  0x24   :  { %1135 = vmatmul.mubr.msk.f32.gmra.mrb[12].mxu0 %vm96_vm0, %v38_v19 }
  0x25   :  { %227 = vmatprep.mubr.f32.mxu0 %v1297_v3 }
  0x28   :  { %1136 = vmatmul.mubr.msk.f32.gmra.mrb[14].mxu0 %vm96_vm0, %v39_v20 }
  0x29   :  { %1092 = vmatprep.mubr.f32.mxu0 %v1297_v3 }
  0xdf   :  { %v187_v21 = vpop.f32.mrb[0].mxu0 }
  0xe0   :  { %v189_v22 = vpop.f32.mrb[1].mxu0 }
  0xe1   :  { %v234_v23 = vadd.f32 %v189_v22, %v187_v21 }
  0xe3   :  { %235 = vadd.xlane.f32.xlu0 %v234_v23  ;;  %v193_v24 = vpop.f32.mrb[2].mxu0 }
  0xe4   :  { %v195_v25 = vpop.f32.mrb[3].mxu0 }
  0xe5   :  { %v237_v26 = vadd.f32 %v195_v25, %v193_v24 }
  0xe7   :  { %238 = vadd.xlane.f32.xlu0 %v237_v26  ;;  %v199_v27 = vpop.f32.mrb[4].mxu0 }
  0xe8   :  { %v201_v28 = vpop.f32.mrb[5].mxu0 }
  0xe9   :  { %v240_v29 = vadd.f32 %v201_v28, %v199_v27 }
  0xeb   :  { %241 = vadd.xlane.f32.xlu1 %v240_v29  ;;  %v205_v30 = vpop.f32.mrb[6].mxu0 }
  0xec   :  { %v207_v31 = vpop.f32.mrb[7].mxu0 }
  0xed   :  { %v243_v32 = vadd.f32 %v207_v31, %v205_v30 }
  0xef   :  { %244 = vadd.xlane.f32.xlu1 %v243_v32  ;;  %v211_v33 = vpop.f32.mrb[8].mxu0 }
  0xf0   :  { %v213_v34 = vpop.f32.mrb[9].mxu0 }
  0xf1   :  { %v246_v35 = vadd.f32 %v213_v34, %v211_v33 }
  0xf3   :  { %247 = vadd.xlane.f32.xlu0 %v246_v35  ;;  %v217_v36 = vpop.f32.mrb[10].mxu0 }
  0xf4   :  { %v219_v37 = vpop.f32.mrb[11].mxu0 }
  0xf5   :  { %v249_v38 = vadd.f32 %v219_v37, %v217_v36 }
  0xf7   :  { %250 = vadd.xlane.f32.xlu1 %v249_v38  ;;  %v223_v39 = vpop.f32.mrb[12].mxu0 }
  0xf8   :  { %v225_v40 = vpop.f32.mrb[13].mxu0 }
  0xf9   :  { %v252_v41 = vadd.f32 %v225_v40, %v223_v39 }
  0xfb   :  { %253 = vadd.xlane.f32.xlu0 %v252_v41  ;;  %v1415_v42 = vpop.f32.mrb[14].mxu0  ;;  %v62_v41 = vld [vmem:[%s1831_s3 + $0x10] sm:$0xff] }
  0xfc   :  { %v1417_v43 = vpop.f32.mrb[15].mxu0 }
  0xfd   :  { %v255_v44 = vadd.f32 %v1417_v43, %v1415_v42 }
  0xff   :  { %256 = vadd.xlane.f32.xlu1 %v255_v44 }
 0x170   :  { %v236_v46 = vpop.xlane.xlu0 %235 }
 0x171   :  { %v258_v47 = vmul.f32 0.00390625, %v236_v46 }
 0x173   :  { %v1421_v48 = vsub.f32 %v187_v21, %v258_v47  ;;  %v1423_v49 = vsub.f32 %v189_v22, %v258_v47 }
 0x174   :  { %v239_v50 = vpop.xlane.xlu0 %238 }
 0x175   :  { %v259_v51 = vmul.f32 0.00390625, %v239_v50  ;;  %v282_v52 = vmul.f32 %v1421_v48, %v1421_v48  ;;  %v283_v53 = vmul.f32 %v1423_v49, %v1423_v49 }
 0x177   :  { %v1429_v54 = vsub.f32 %v193_v24, %v259_v51  ;;  %v1431_v55 = vsub.f32 %v195_v25, %v259_v51  ;;  %v298_v56 = vadd.f32 %v283_v53, %v282_v52 }
 0x178   :  { %v242_v57 = vpop.xlane.xlu1 %241 }
 0x179   :  { %v260_v58 = vmul.f32 0.00390625, %v242_v57  ;;  %299 = vadd.xlane.f32.xlu0 %v298_v56  ;;  %v284_v59 = vmul.f32 %v1429_v54, %v1429_v54  ;;  %v285_v60 = vmul.f32 %v1431_v55, %v1431_v55 }
 0x17b   :  { %v1437_v61 = vsub.f32 %v199_v27, %v260_v58  ;;  %v1439_v62 = vsub.f32 %v201_v28, %v260_v58  ;;  %v301_v63 = vadd.f32 %v285_v60, %v284_v59  ;;  %v52_v59 = vld [vmem:[%s1832_s2] sm:$0xff] }
 0x17c   :  { %v245_v0 = vpop.xlane.xlu1 %244 }
 0x17d   :  { %v261_v1 = vmul.f32 0.00390625, %v245_v0  ;;  %302 = vadd.xlane.f32.xlu1 %v301_v63  ;;  %v286_v2 = vmul.f32 %v1437_v61, %v1437_v61  ;;  %v287_v4 = vmul.f32 %v1439_v62, %v1439_v62 }
 0x17f   :  { %v1445_v5 = vsub.f32 %v205_v30, %v261_v1  ;;  %v1447_v6 = vsub.f32 %v207_v31, %v261_v1  ;;  %v304_v7 = vadd.f32 %v287_v4, %v286_v2  ;;  %v53_v4 = vld [vmem:[%s1832_s2 + $0x8] sm:$0xff] }
 0x180   :  { %v248_v8 = vpop.xlane.xlu0 %247 }
 0x181   :  { %v262_v9 = vmul.f32 0.00390625, %v248_v8  ;;  %305 = vadd.xlane.f32.xlu0 %v304_v7  ;;  %v288_v10 = vmul.f32 %v1445_v5, %v1445_v5  ;;  %v289_v11 = vmul.f32 %v1447_v6, %v1447_v6 }
 0x183   :  { %v1453_v12 = vsub.f32 %v211_v33, %v262_v9  ;;  %v1455_v13 = vsub.f32 %v213_v34, %v262_v9  ;;  %v307_v14 = vadd.f32 %v289_v11, %v288_v10  ;;  %v65_v9 = vld [vmem:[%s1831_s3 + $0x28] sm:$0xff] }
 0x184   :  { %v251_v15 = vpop.xlane.xlu1 %250 }
 0x185   :  { %v263_v16 = vmul.f32 0.00390625, %v251_v15  ;;  %308 = vadd.xlane.f32.xlu1 %v307_v14  ;;  %v290_v17 = vmul.f32 %v1453_v12, %v1453_v12  ;;  %v291_v18 = vmul.f32 %v1455_v13, %v1455_v13  ;;  %v54_v15 = vld [vmem:[%s1832_s2 + $0x10] sm:$0xff] }
 0x187   :  { %v1461_v19 = vsub.f32 %v217_v36, %v263_v16  ;;  %v1463_v20 = vsub.f32 %v219_v37, %v263_v16  ;;  %v310_v21 = vadd.f32 %v291_v18, %v290_v17 }
 0x188   :  { %v254_v22 = vpop.xlane.xlu0 %253 }
 0x189   :  { %v264_v23 = vmul.f32 0.00390625, %v254_v22  ;;  %311 = vadd.xlane.f32.xlu0 %v310_v21  ;;  %v292_v24 = vmul.f32 %v1461_v19, %v1461_v19  ;;  %v293_v25 = vmul.f32 %v1463_v20, %v1463_v20 }
 0x18b   :  { %v1469_v26 = vsub.f32 %v223_v39, %v264_v23  ;;  %v1471_v27 = vsub.f32 %v225_v40, %v264_v23  ;;  %v313_v28 = vadd.f32 %v293_v25, %v292_v24  ;;  %v60_v39 = vld [vmem:[%s1831_s3] sm:$0xff]  ;;  %v61_v40 = vld [vmem:[%s1831_s3 + $0x8] sm:$0xff]  ;;  %v55_v23 = vld [vmem:[%s1832_s2 + $0x18] sm:$0xff] }
 0x18c   :  { %v257_v29 = vpop.xlane.xlu1 %256 }
 0x18d   :  { %v265_v30 = vmul.f32 0.00390625, %v257_v29  ;;  %314 = vadd.xlane.f32.xlu1 %v313_v28  ;;  %v294_v31 = vmul.f32 %v1469_v26, %v1469_v26  ;;  %v295_v32 = vmul.f32 %v1471_v27, %v1471_v27 }
 0x18f   :  { %v1478_v33 = vsub.f32 %v1415_v42, %v265_v30  ;;  %v1481_v34 = vsub.f32 %v1417_v43, %v265_v30  ;;  %v316_v35 = vadd.f32 %v295_v32, %v294_v31  ;;  %v63_v42 = vld [vmem:[%s1831_s3 + $0x18] sm:$0xff]  ;;  %v64_v43 = vld [vmem:[%s1831_s3 + $0x20] sm:$0xff] }
 0x190   :  { %v56_v31 = vld [vmem:[%s1832_s2 + $0x20] sm:$0xff] }
 0x191   :  { %317 = vadd.xlane.f32.xlu0 %v316_v35  ;;  %v296_v36 = vmul.f32 %v1478_v33, %v1478_v33  ;;  %v297_v37 = vmul.f32 %v1481_v34, %v1481_v34 }
 0x193   :  { %v319_v38 = vadd.f32 %v297_v37, %v296_v36  ;;  %v57_v37 = vld [vmem:[%s1832_s2 + $0x28] sm:$0xff] }
 0x195   :  { %320 = vadd.xlane.f32.xlu1 %v319_v38 }
 0x1a6   :  { %412 = vperm.xlu1 %1199, %v60_v39  }
 0x1aa   :  { %417 = vperm.xlu1 %1199, %v61_v40   ;;  %v58_v40 = vld [vmem:[%s1832_s2 + $0x30] sm:$0xff] }
 0x1ae   :  { %422 = vperm.xlu1 %1199, %v62_v41  }
 0x1b2   :  { %427 = vperm.xlu1 %1199, %v63_v42  }
 0x1b6   :  { %432 = vperm.xlu1 %1199, %v64_v43   ;;  %v59_v43 = vld [vmem:[%s1832_s2 + $0x38] sm:$0xff] }
 0x206   :  { %v300_v44 = vpop.xlane.xlu0 %299 }
 0x207   :  { %v322_v45 = vmul.f32 0.00390625, %v300_v44 }
 0x209   :  { %v330_v46 = vadd.f32 1e-05, %v322_v45  ;;  %v66_v45 = vld [vmem:[%s1831_s3 + $0x30] sm:$0xff] }
 0x20a   :  { %v303_v47 = vpop.xlane.xlu1 %302 }
 0x20b   :  { %1201 = vrsqrt.f32 %v330_v46  ;;  %v323_v50 = vmul.f32 0.00390625, %v303_v47  ;;  %v67_v47 = vld [vmem:[%s1831_s3 + $0x38] sm:$0xff] }
 0x20d   :  { %v331_v51 = vadd.f32 1e-05, %v323_v50 }
 0x20e   :  { %v306_v52 = vpop.xlane.xlu0 %305 }
 0x20f   :  { %1203 = vrsqrt.f32 %v331_v51  ;;  %v324_v53 = vmul.f32 0.00390625, %v306_v52 }
 0x211   :  { %v332_v56 = vadd.f32 1e-05, %v324_v53 }
 0x212   :  { %v309_v57 = vpop.xlane.xlu1 %308 }
 0x213   :  { %1205 = vrsqrt.f32 %v332_v56  ;;  %v325_v58 = vmul.f32 0.00390625, %v309_v57 }
 0x215   :  { %v1202_v60 = vpop.eup %1201  ;;  %v333_v63 = vadd.f32 1e-05, %v325_v58 }
 0x216   :  { %v312_v0 = vpop.xlane.xlu0 %311  ;;  %v346_v1 = vmul.f32 %v1202_v60, %v52_v59 }
 0x217   :  { %1207 = vrsqrt.f32 %v333_v63  ;;  %v326_v2 = vmul.f32 0.00390625, %v312_v0 }
 0x218   :  { %356 = vperm.xlu0 %1200, %v346_v1  }
 0x219   :  { %v1204_v7 = vpop.eup %1203  ;;  %v334_v8 = vadd.f32 1e-05, %v326_v2 }
 0x21a   :  { %v315_v10 = vpop.xlane.xlu1 %314  ;;  %v347_v11 = vmul.f32 %v1204_v7, %v53_v4 }
 0x21b   :  { %1209 = vrsqrt.f32 %v334_v8  ;;  %v327_v14 = vmul.f32 0.00390625, %v315_v10 }
 0x21c   :  { %361 = vperm.xlu1 %1199, %v347_v11   ;;  %437 = vperm.xlu0 %1200, %v65_v9  }
 0x21d   :  { %v1206_v16 = vpop.eup %1205  ;;  %v335_v17 = vadd.f32 1e-05, %v327_v14 }
 0x21e   :  { %v318_v18 = vpop.xlane.xlu0 %317  ;;  %v348_v21 = vmul.f32 %v1206_v16, %v54_v15 }
 0x21f   :  { %1211 = vrsqrt.f32 %v335_v17  ;;  %v328_v22 = vmul.f32 0.00390625, %v318_v18 }
 0x220   :  { %366 = vperm.xlu1 %1199, %v348_v21  }
 0x221   :  { %v1208_v24 = vpop.eup %1207  ;;  %v336_v25 = vadd.f32 1e-05, %v328_v22 }
 0x222   :  { %v321_v28 = vpop.xlane.xlu1 %320  ;;  %v349_v29 = vmul.f32 %v1208_v24, %v55_v23 }
 0x223   :  { %1213 = vrsqrt.f32 %v336_v25  ;;  %v329_v30 = vmul.f32 0.00390625, %v321_v28 }
 0x224   :  { %371 = vperm.xlu1 %1199, %v349_v29  }
 0x225   :  { %v1210_v32 = vpop.eup %1209  ;;  %v337_v35 = vadd.f32 1e-05, %v329_v30 }
 0x226   :  { %v350_v36 = vmul.f32 %v1210_v32, %v56_v31  ;;  %v413_v50 = vpop.permute.xlu1 %412 }
 0x227   :  { %1215 = vrsqrt.f32 %v337_v35 }
 0x228   :  { %376 = vperm.xlu1 %1199, %v350_v36  }
 0x229   :  { %v1212_v38 = vpop.eup %1211 }
 0x22a   :  { %v351_v39 = vmul.f32 %v1212_v38, %v57_v37  ;;  %v418_v51 = vpop.permute.xlu1 %417 }
 0x22c   :  { %381 = vperm.xlu0 %1200, %v351_v39  }
 0x22d   :  { %v1214_v41 = vpop.eup %1213 }
 0x22e   :  { %v352_v42 = vmul.f32 %v1214_v41, %v58_v40  ;;  %v423_v52 = vpop.permute.xlu1 %422 }
 0x230   :  { %386 = vperm.xlu1 %1199, %v352_v42  }
 0x231   :  { %v1216_v44 = vpop.eup %1215 }
 0x232   :  { %v353_v46 = vmul.f32 %v1216_v44, %v59_v43  ;;  %v428_v53 = vpop.permute.xlu1 %427 }
 0x234   :  { %442 = vperm.xlu1 %1199, %v66_v45   ;;  %391 = vperm.xlu0 %1200, %v353_v46  }
 0x236   :  { %v433_v56 = vpop.permute.xlu1 %432 }
 0x238   :  { %447 = vperm.xlu0 %1200, %v67_v47  }
 0x297   :  { %v357_v57 = vpop.permute.xlu0 %356 }
 0x298   :  { %v394_v58 = vmul.f32 %v357_v57, %v1421_v48  ;;  %v395_v59 = vmul.f32 %v357_v57, %v1423_v49 }
 0x29a   :  { %v450_v60 = vadd.f32 %v413_v50, %v394_v58  ;;  %v451_v63 = vadd.f32 %v413_v50, %v395_v59 }
 0x29b   :  { %v362_v0 = vpop.permute.xlu1 %361  ;;  %v438_v22 = vpop.permute.xlu0 %437 }
 0x29c   :  { %v482_v1 = vmul.f32 0.70710677, %v450_v60  ;;  %v483_v2 = vmul.f32 0.70710677, %v451_v63  ;;  %v396_v4 = vmul.f32 %v362_v0, %v1429_v54  ;;  %v397_v7 = vmul.f32 %v362_v0, %v1431_v55 }
 0x29d   :  { %v467_v38 = vmul.f32 0.5, %v451_v63  ;;  %v466_v42 = vmul.f32 0.5, %v450_v60 }
 0x29e   :  { %1217 = verf.f32 %v482_v1  ;;  %v452_v8 = vadd.f32 %v418_v51, %v396_v4  ;;  %v453_v9 = vadd.f32 %v418_v51, %v397_v7 }
 0x29f   :  { %1219 = verf.f32 %v483_v2  ;;  %v367_v10 = vpop.permute.xlu1 %366 }
 0x2a0   :  { %v484_v11 = vmul.f32 0.70710677, %v452_v8  ;;  %v485_v14 = vmul.f32 0.70710677, %v453_v9  ;;  %v398_v48 = vmul.f32 %v367_v10, %v1437_v61  ;;  %v399_v49 = vmul.f32 %v367_v10, %v1439_v62 }
 0x2a1   :  { %v469_v43 = vmul.f32 0.5, %v453_v9  ;;  %v468_v45 = vmul.f32 0.5, %v452_v8 }
 0x2a2   :  { %1221 = verf.f32 %v484_v11  ;;  %v454_v15 = vadd.f32 %v423_v52, %v398_v48  ;;  %v1541_v16 = vadd.f32 %v423_v52, %v399_v49 }
 0x2a3   :  { %1223 = verf.f32 %v485_v14  ;;  %v372_v17 = vpop.permute.xlu1 %371 }
 0x2a4   :  { %v486_v54 = vmul.f32 0.70710677, %v454_v15  ;;  %v487_v55 = vmul.f32 0.70710677, %v1541_v16  ;;  %v400_v18 = vmul.f32 %v372_v17, %v1445_v5  ;;  %v401_v21 = vmul.f32 %v372_v17, %v1447_v6 }
 0x2a5   :  { %v470_v7 = vmul.f32 0.5, %v454_v15 }
 0x2a6   :  { %1225 = verf.f32 %v486_v54  ;;  %v456_v23 = vadd.f32 %v428_v53, %v400_v18  ;;  %v1546_v24 = vadd.f32 %v428_v53, %v401_v21 }
 0x2a7   :  { %v377_v61 = vpop.permute.xlu1 %376  ;;  %1227 = verf.f32 %v487_v55 }
 0x2a8   :  { %v1218_v62 = vpop.eup %1217  ;;  %v402_v25 = vmul.f32 %v377_v61, %v1453_v12  ;;  %v403_v28 = vmul.f32 %v377_v61, %v1455_v13  ;;  %v488_v30 = vmul.f32 0.70710677, %v456_v23  ;;  %v489_v31 = vmul.f32 0.70710677, %v1546_v24 }
 0x2a9   :  { %v1220_v29 = vpop.eup %1219  ;;  %v514_v39 = vadd.f32 1.0, %v1218_v62  ;;  %v472_v10 = vmul.f32 0.5, %v456_v23  ;;  %v473_v15 = vmul.f32 0.5, %v1546_v24 }
 0x2aa   :  { %v1551_v32 = vadd.f32 %v433_v56, %v402_v25  ;;  %v1553_v5 = vadd.f32 %v433_v56, %v403_v28  ;;  %1229 = verf.f32 %v488_v30  ;;  %v515_v35 = vadd.f32 1.0, %v1220_v29 }
 0x2ab   :  { %v382_v6 = vpop.permute.xlu0 %381  ;;  %1231 = verf.f32 %v489_v31  ;;  %v530_v56 = vmul.f32 %v514_v39, %v466_v42 }
 0x2ac   :  { %v1222_v36 = vpop.eup %1221  ;;  %v490_v37 = vmul.f32 0.70710677, %v1551_v32  ;;  %v491_v13 = vmul.f32 0.70710677, %v1553_v5  ;;  %v404_v40 = vmul.f32 %v382_v6, %v1461_v19  ;;  %v405_v41 = vmul.f32 %v382_v6, %v1463_v20 }
 0x2ad   :  { %v1224_v12 = vpop.eup %1223  ;;  %v516_v46 = vadd.f32 1.0, %v1222_v36  ;;  %v531_v52 = vmul.f32 %v515_v35, %v467_v38  ;;  %v474_v38 = vmul.f32 0.5, %v1551_v32 }
 0x2ae   :  { %v517_v44 = vadd.f32 1.0, %v1224_v12  ;;  %1233 = verf.f32 %v490_v37  ;;  %v460_v47 = vadd.f32 %v438_v22, %v404_v40  ;;  %v1559_v50 = vadd.f32 %v438_v22, %v405_v41 }
 0x2af   :  { %v387_v51 = vpop.permute.xlu1 %386  ;;  %1235 = verf.f32 %v491_v13  ;;  %v532_v57 = vmul.f32 %v516_v46, %v468_v45  ;;  %v475_v13 = vmul.f32 0.5, %v1553_v5 }
 0x2b0   :  { %v533_v53 = vmul.f32 %v517_v44, %v469_v43  ;;  %v1226_v58 = vpop.eup %1225  ;;  %v492_v59 = vmul.f32 0.70710677, %v460_v47  ;;  %v493_v19 = vmul.f32 0.70710677, %v1559_v50  ;;  %v406_v60 = vmul.f32 %v387_v51, %v1469_v26 }
 0x2b1   :  { %v1228_v20 = vpop.eup %1227  ;;  %v1159_v0 = vpack.c.bf16 %v532_v57, %v530_v56  ;;  %v407_v1 = vmul.f32 %v387_v51, %v1471_v27  ;;  %v518_v48 = vadd.f32 1.0, %v1226_v58  ;;  %v471_v27 = vmul.f32 0.5, %v1541_v16 }
 0x2b2   :  { %v1157_v63 = vpack.c.bf16 %v533_v53, %v531_v52  ;;  %1237 = verf.f32 %v492_v59  ;;  %v519_v14 = vadd.f32 1.0, %v1228_v20  ;;  %v476_v39 = vmul.f32 0.5, %v460_v47 }
 0x2b3   :  { %v392_v2 = vpop.permute.xlu0 %391  ;;  %v443_v4 = vpop.permute.xlu1 %442  ;;  %1239 = verf.f32 %v493_v19  ;;  %v477_v40 = vmul.f32 0.5, %v1559_v50 }
 0x2b4   :  { %1158 = vmatprep.subr.bf16.mxu1 %v1157_v63  ;;  %v462_v8 = vadd.f32 %v443_v4, %v406_v60  ;;  %v1230_v9 = vpop.eup %1229  ;;  %v463_v11 = vadd.f32 %v443_v4, %v407_v1  ;;  %v408_v26 = vmul.f32 %v392_v2, %v1478_v33  ;;  %v409_v17 = vmul.f32 %v392_v2, %v1481_v34 }
 0x2b5   :  { %1160 = vmatpush1.bf16.msra.mxu1 %v1159_v0  ;;  %v1232_v49 = vpop.eup %1231  ;;  %v520_v55 = vadd.f32 1.0, %v1230_v9  ;;  %v535_v28 = vmul.f32 %v519_v14, %v471_v27  ;;  %v534_v33 = vmul.f32 %v518_v48, %v470_v7  ;;  %v40_v7 = vld [vmem:[%s1833_s4] sm:$0xff]  ;;  %v42_v9 = vld [vmem:[%s1833_s4 + $0x10] sm:$0xff]  ;;  %v45_v14 = vld [vmem:[%s1833_s4 + $0x28] sm:$0xff] }
 0x2b6   :  { %v494_v54 = vmul.f32 0.70710677, %v462_v8  ;;  %v495_v18 = vmul.f32 0.70710677, %v463_v11  ;;  %v521_v22 = vadd.f32 1.0, %v1232_v49  ;;  %v478_v58 = vmul.f32 0.5, %v462_v8 }
 0x2b7   :  { %v448_v21 = vpop.permute.xlu0 %447  ;;  %v536_v62 = vmul.f32 %v520_v55, %v472_v10  ;;  %v479_v19 = vmul.f32 0.5, %v463_v11  ;;  %v41_v8 = vld [vmem:[%s1833_s4 + $0x8] sm:$0xff]  ;;  %v43_v10 = vld [vmem:[%s1833_s4 + $0x18] sm:$0xff]  ;;  %v44_v11 = vld [vmem:[%s1833_s4 + $0x20] sm:$0xff] }
 0x2b8   :  { %1241 = verf.f32 %v494_v54  ;;  %v464_v23 = vadd.f32 %v448_v21, %v408_v26  ;;  %v465_v61 = vadd.f32 %v448_v21, %v409_v17  ;;  %v1234_v25 = vpop.eup %1233  ;;  %v537_v29 = vmul.f32 %v521_v22, %v473_v15  ;;  %v46_v48 = vld [vmem:[%s1833_s4 + $0x30] sm:$0xff]  ;;  %v47_v49 = vld [vmem:[%s1833_s4 + $0x38] sm:$0xff] }
 0x2b9   :  { %1243 = verf.f32 %v495_v18  ;;  %v1236_v30 = vpop.eup %1235  ;;  %v1163_v35 = vpack.c.bf16 %v536_v62, %v534_v33  ;;  %v522_v16 = vadd.f32 1.0, %v1234_v25 }
 0x2ba   :  { %v496_v34 = vmul.f32 0.70710677, %v464_v23  ;;  %v497_v31 = vmul.f32 0.70710677, %v465_v61  ;;  %v1161_v6 = vpack.c.bf16 %v537_v29, %v535_v28  ;;  %v523_v36 = vadd.f32 1.0, %v1236_v30 }
 0x2bb   :  { %v538_v42 = vmul.f32 %v522_v16, %v474_v38  ;;  %v480_v59 = vmul.f32 0.5, %v464_v23  ;;  %v481_v50 = vmul.f32 0.5, %v465_v61 }
 0x2bc   :  { %1245 = verf.f32 %v496_v34  ;;  %v1238_v24 = vpop.eup %1237  ;;  %1162 = vmatprep.subr.bf16.mxu1 %v1161_v6  ;;  %v539_v44 = vmul.f32 %v523_v36, %v475_v13 }
 0x2bd   :  { %1247 = verf.f32 %v497_v31  ;;  %v1240_v37 = vpop.eup %1239  ;;  %1164 = vmatpush1.bf16.msra.mxu1 %v1163_v35  ;;  %v524_v12 = vadd.f32 1.0, %v1238_v24 }
 0x2be   :  { %v525_v41 = vadd.f32 1.0, %v1240_v37 }
 0x2bf   :  { %v540_v43 = vmul.f32 %v524_v12, %v476_v39 }
 0x2c0   :  { %v541_v45 = vmul.f32 %v525_v41, %v477_v40 }
 0x2c1   :  { %v1167_v51 = vpack.c.bf16 %v540_v43, %v538_v42 }
 0x2c2   :  { %v1242_v46 = vpop.eup %1241  ;;  %v1165_v53 = vpack.c.bf16 %v541_v45, %v539_v44 }
 0x2c3   :  { %v1244_v52 = vpop.eup %1243  ;;  %v526_v56 = vadd.f32 1.0, %v1242_v46 }
 0x2c4   :  { %1166 = vmatprep.subr.bf16.mxu1 %v1165_v53  ;;  %v527_v32 = vadd.f32 1.0, %v1244_v52 }
 0x2c5   :  { %1168 = vmatpush1.bf16.msra.mxu1 %v1167_v51  ;;  %v542_v60 = vmul.f32 %v526_v56, %v478_v58 }
 0x2c6   :  { %v1246_v57 = vpop.eup %1245  ;;  %v543_v0 = vmul.f32 %v527_v32, %v479_v19 }
 0x2c7   :  { %v1248_v47 = vpop.eup %1247  ;;  %v528_v5 = vadd.f32 1.0, %v1246_v57 }
 0x2c8   :  { %v529_v20 = vadd.f32 1.0, %v1248_v47 }
 0x2c9   :  { %v544_v63 = vmul.f32 %v528_v5, %v480_v59 }
 0x2ca   :  { %v545_v1 = vmul.f32 %v529_v20, %v481_v50 }
 0x2cb   :  { %v1171_v2 = vpack.c.bf16 %v544_v63, %v542_v60 }
 0x2cc   :  { %v1169_v4 = vpack.c.bf16 %v545_v1, %v543_v0 }
 0x2ce   :  { %1170 = vmatprep.subr.bf16.mxu1 %v1169_v4 }
 0x2cf   :  { %1172 = vmatpush1.bf16.msra.mxu1 %v1171_v2 }
 0x2d2   :  { %1137 = vmatmul.mubr.msk.f32.vlgmr.msra.gmra.mrb[0].mxu1 %vm546_vm1, %v40_v7 }
 0x2d3   :  { %641 = vmatprep.mubr.f32.mxu1 %v1297_v3 }
 0x2d6   :  { %1138 = vmatmul.mubr.msk.f32.gmra.mrb[2].mxu1 %vm546_vm1, %v41_v8 }
 0x2d7   :  { %647 = vmatprep.mubr.f32.mxu1 %v1297_v3 }
 0x2da   :  { %1139 = vmatmul.mubr.msk.f32.gmra.mrb[4].mxu1 %vm546_vm1, %v42_v9 }
 0x2db   :  { %653 = vmatprep.mubr.f32.mxu1 %v1297_v3 }
 0x2de   :  { %1140 = vmatmul.mubr.msk.f32.gmra.mrb[6].mxu1 %vm546_vm1, %v43_v10 }
 0x2df   :  { %659 = vmatprep.mubr.f32.mxu1 %v1297_v3 }
 0x2e2   :  { %1141 = vmatmul.mubr.msk.f32.gmra.mrb[8].mxu1 %vm546_vm1, %v44_v11 }
 0x2e3   :  { %665 = vmatprep.mubr.f32.mxu1 %v1297_v3 }
 0x2e6   :  { %1142 = vmatmul.mubr.msk.f32.gmra.mrb[10].mxu1 %vm546_vm1, %v45_v14 }
 0x2e7   :  { %671 = vmatprep.mubr.f32.mxu1 %v1297_v3 }
 0x2ea   :  { %1143 = vmatmul.mubr.msk.f32.gmra.mrb[12].mxu1 %vm546_vm1, %v46_v48 }
 0x2eb   :  { %677 = vmatprep.mubr.f32.mxu1 %v1297_v3 }
 0x2ee   :  { %1144 = vmatmul.mubr.msk.f32.gmra.mrb[14].mxu1 %vm546_vm1, %v47_v49 }
 0x2ef   :  { %1110 = vmatprep.mubr.f32.mxu1 %v1297_v3 }
 0x3a5   :  { %v637_v26 = vpop.f32.mrb[0].mxu1 }
 0x3a6   :  { %v639_v17 = vpop.f32.mrb[1].mxu1 }
 0x3a7   :  { %v684_v54 = vadd.f32 %v639_v17, %v637_v26 }
 0x3a9   :  { %685 = vadd.xlane.f32.xlu1 %v684_v54  ;;  %v643_v55 = vpop.f32.mrb[2].mxu1 }
 0x3aa   :  { %v645_v27 = vpop.f32.mrb[3].mxu1 }
 0x3ab   :  { %v687_v15 = vadd.f32 %v645_v27, %v643_v55 }
 0x3ad   :  { %688 = vadd.xlane.f32.xlu0 %v687_v15  ;;  %v649_v18 = vpop.f32.mrb[4].mxu1 }
 0x3ae   :  { %v651_v21 = vpop.f32.mrb[5].mxu1 }
 0x3af   :  { %v690_v22 = vadd.f32 %v651_v21, %v649_v18 }
 0x3b1   :  { %691 = vadd.xlane.f32.xlu0 %v690_v22  ;;  %v655_v23 = vpop.f32.mrb[6].mxu1 }
 0x3b2   :  { %v657_v61 = vpop.f32.mrb[7].mxu1 }
 0x3b3   :  { %v693_v62 = vadd.f32 %v657_v61, %v655_v23 }
 0x3b5   :  { %694 = vadd.xlane.f32.xlu1 %v693_v62  ;;  %v661_v25 = vpop.f32.mrb[8].mxu1 }
 0x3b6   :  { %v663_v28 = vpop.f32.mrb[9].mxu1 }
 0x3b7   :  { %v696_v29 = vadd.f32 %v663_v28, %v661_v25 }
 0x3b9   :  { %697 = vadd.xlane.f32.xlu0 %v696_v29  ;;  %v667_v33 = vpop.f32.mrb[10].mxu1 }
 0x3ba   :  { %v669_v30 = vpop.f32.mrb[11].mxu1 }
 0x3bb   :  { %v699_v34 = vadd.f32 %v669_v30, %v667_v33 }
 0x3bd   :  { %700 = vadd.xlane.f32.xlu1 %v699_v34  ;;  %v673_v31 = vpop.f32.mrb[12].mxu1  ;;  %v76_v34 = vld [vmem:[%s1834_s6] sm:$0xff] }
 0x3be   :  { %v675_v6 = vpop.f32.mrb[13].mxu1 }
 0x3bf   :  { %v702_v35 = vadd.f32 %v675_v6, %v673_v31 }
 0x3c1   :  { %703 = vadd.xlane.f32.xlu0 %v702_v35  ;;  %v679_v16 = vpop.f32.mrb[14].mxu1  ;;  %v79_v35 = vld [vmem:[%s1834_s6 + $0x18] sm:$0xff] }
 0x3c2   :  { %v681_v24 = vpop.f32.mrb[15].mxu1 }
 0x3c3   :  { %v705_v36 = vadd.f32 %v681_v24, %v679_v16 }
 0x3c5   :  { %706 = vadd.xlane.f32.xlu1 %v705_v36 }
 0x436   :  { %v686_v37 = vpop.xlane.xlu1 %685 }
 0x437   :  { %v708_v38 = vmul.f32 0.00390625, %v686_v37 }
 0x439   :  { %v1611_v39 = vsub.f32 %v637_v26, %v708_v38  ;;  %v1613_v12 = vsub.f32 %v639_v17, %v708_v38 }
 0x43a   :  { %v689_v13 = vpop.xlane.xlu0 %688 }
 0x43b   :  { %v709_v40 = vmul.f32 0.00390625, %v689_v13  ;;  %v732_v41 = vmul.f32 %v1611_v39, %v1611_v39  ;;  %v733_v42 = vmul.f32 %v1613_v12, %v1613_v12 }
 0x43d   :  { %v1619_v43 = vsub.f32 %v643_v55, %v709_v40  ;;  %v1621_v44 = vsub.f32 %v645_v27, %v709_v40  ;;  %v748_v45 = vadd.f32 %v733_v42, %v732_v41 }
 0x43e   :  { %v692_v46 = vpop.xlane.xlu0 %691 }
 0x43f   :  { %v710_v51 = vmul.f32 0.00390625, %v692_v46  ;;  %749 = vadd.xlane.f32.xlu0 %v748_v45  ;;  %v734_v52 = vmul.f32 %v1619_v43, %v1619_v43  ;;  %v735_v53 = vmul.f32 %v1621_v44, %v1621_v44 }
 0x441   :  { %v1627_v56 = vsub.f32 %v649_v18, %v710_v51  ;;  %v1629_v57 = vsub.f32 %v651_v21, %v710_v51  ;;  %v751_v32 = vadd.f32 %v735_v53, %v734_v52  ;;  %v68_v53 = vld [vmem:[%s1835_s5] sm:$0xff] }
 0x442   :  { %v695_v47 = vpop.xlane.xlu1 %694 }
 0x443   :  { %v711_v58 = vmul.f32 0.00390625, %v695_v47  ;;  %752 = vadd.xlane.f32.xlu1 %v751_v32  ;;  %v736_v59 = vmul.f32 %v1627_v56, %v1627_v56  ;;  %v737_v5 = vmul.f32 %v1629_v57, %v1629_v57 }
 0x445   :  { %v1635_v19 = vsub.f32 %v655_v23, %v711_v58  ;;  %v1637_v50 = vsub.f32 %v657_v61, %v711_v58  ;;  %v754_v20 = vadd.f32 %v737_v5, %v736_v59 }
 0x446   :  { %v698_v60 = vpop.xlane.xlu0 %697 }
 0x447   :  { %v712_v63 = vmul.f32 0.00390625, %v698_v60  ;;  %755 = vadd.xlane.f32.xlu0 %v754_v20  ;;  %v738_v0 = vmul.f32 %v1635_v19, %v1635_v19  ;;  %v739_v1 = vmul.f32 %v1637_v50, %v1637_v50  ;;  %v69_v20 = vld [vmem:[%s1835_s5 + $0x8] sm:$0xff] }
 0x449   :  { %v1643_v2 = vsub.f32 %v661_v25, %v712_v63  ;;  %v1645_v4 = vsub.f32 %v663_v28, %v712_v63  ;;  %v757_v7 = vadd.f32 %v739_v1, %v738_v0 }
 0x44a   :  { %v701_v8 = vpop.xlane.xlu1 %700 }
 0x44b   :  { %v713_v9 = vmul.f32 0.00390625, %v701_v8  ;;  %758 = vadd.xlane.f32.xlu1 %v757_v7  ;;  %v740_v10 = vmul.f32 %v1643_v2, %v1643_v2  ;;  %v741_v11 = vmul.f32 %v1645_v4, %v1645_v4  ;;  %v70_v8 = vld [vmem:[%s1835_s5 + $0x10] sm:$0xff] }
 0x44d   :  { %v1651_v14 = vsub.f32 %v667_v33, %v713_v9  ;;  %v1653_v48 = vsub.f32 %v669_v30, %v713_v9  ;;  %v760_v49 = vadd.f32 %v741_v11, %v740_v10 }
 0x44e   :  { %v704_v26 = vpop.xlane.xlu0 %703 }
 0x44f   :  { %v714_v17 = vmul.f32 0.00390625, %v704_v26  ;;  %761 = vadd.xlane.f32.xlu0 %v760_v49  ;;  %v742_v54 = vmul.f32 %v1651_v14, %v1651_v14  ;;  %v743_v55 = vmul.f32 %v1653_v48, %v1653_v48 }
 0x451   :  { %v1659_v27 = vsub.f32 %v673_v31, %v714_v17  ;;  %v1661_v15 = vsub.f32 %v675_v6, %v714_v17  ;;  %v763_v18 = vadd.f32 %v743_v55, %v742_v54  ;;  %v77_v31 = vld [vmem:[%s1834_s6 + $0x8] sm:$0xff]  ;;  %v78_v6 = vld [vmem:[%s1834_s6 + $0x10] sm:$0xff]  ;;  %v71_v17 = vld [vmem:[%s1835_s5 + $0x18] sm:$0xff] }
 0x452   :  { %v707_v21 = vpop.xlane.xlu1 %706 }
 0x453   :  { %v715_v22 = vmul.f32 0.00390625, %v707_v21  ;;  %764 = vadd.xlane.f32.xlu1 %v763_v18  ;;  %v744_v23 = vmul.f32 %v1659_v27, %v1659_v27  ;;  %v745_v61 = vmul.f32 %v1661_v15, %v1661_v15 }
 0x455   :  { %v1667_v62 = vsub.f32 %v679_v16, %v715_v22  ;;  %v1669_v25 = vsub.f32 %v681_v24, %v715_v22  ;;  %v766_v28 = vadd.f32 %v745_v61, %v744_v23  ;;  %v80_v16 = vld [vmem:[%s1834_s6 + $0x20] sm:$0xff]  ;;  %v81_v24 = vld [vmem:[%s1834_s6 + $0x28] sm:$0xff] }
 0x456   :  { %v72_v23 = vld [vmem:[%s1835_s5 + $0x20] sm:$0xff] }
 0x457   :  { %767 = vadd.xlane.f32.xlu0 %v766_v28  ;;  %v746_v29 = vmul.f32 %v1667_v62, %v1667_v62  ;;  %v747_v33 = vmul.f32 %v1669_v25, %v1669_v25 }
 0x459   :  { %v769_v30 = vadd.f32 %v747_v33, %v746_v29  ;;  %v73_v33 = vld [vmem:[%s1835_s5 + $0x28] sm:$0xff] }
 0x45b   :  { %770 = vadd.xlane.f32.xlu1 %v769_v30 }
 0x46c   :  { %862 = vperm.xlu1 %1199, %v76_v34  }
 0x46d   :  { %867 = vperm.xlu0 %1200, %v77_v31   ;;  %v74_v31 = vld [vmem:[%s1835_s5 + $0x30] sm:$0xff] }
 0x470   :  { %872 = vperm.xlu1 %1199, %v78_v6  }
 0x471   :  { %877 = vperm.xlu0 %1200, %v79_v35  }
 0x474   :  { %882 = vperm.xlu1 %1199, %v80_v16   ;;  %v75_v16 = vld [vmem:[%s1835_s5 + $0x38] sm:$0xff] }
 0x475   :  { %887 = vperm.xlu0 %1200, %v81_v24  }
 0x4cc   :  { %v750_v36 = vpop.xlane.xlu0 %749 }
 0x4cd   :  { %v772_v37 = vmul.f32 0.00390625, %v750_v36  ;;  %v82_v36 = vld [vmem:[%s1834_s6 + $0x30] sm:$0xff] }
 0x4cf   :  { %v780_v38 = vadd.f32 1e-05, %v772_v37 }
 0x4d0   :  { %v753_v13 = vpop.xlane.xlu1 %752 }
 0x4d1   :  { %1249 = vrsqrt.f32 %v780_v38  ;;  %v773_v40 = vmul.f32 0.00390625, %v753_v13  ;;  %v84_v38 = vld [vmem:[%s1836_s8] sm:$0xff]  ;;  %v83_v13 = vld [vmem:[%s1834_s6 + $0x38] sm:$0xff] }
 0x4d3   :  { %v781_v41 = vadd.f32 1e-05, %v773_v40  ;;  %v86_v40 = vld [vmem:[%s1836_s8 + $0x10] sm:$0xff] }
 0x4d4   :  { %v756_v42 = vpop.xlane.xlu0 %755 }
 0x4d5   :  { %1251 = vrsqrt.f32 %v781_v41  ;;  %v774_v45 = vmul.f32 0.00390625, %v756_v42  ;;  %v85_v41 = vld [vmem:[%s1836_s8 + $0x8] sm:$0xff]  ;;  %v87_v42 = vld [vmem:[%s1836_s8 + $0x18] sm:$0xff] }
 0x4d7   :  { %v782_v46 = vadd.f32 1e-05, %v774_v45 }
 0x4d8   :  { %v759_v51 = vpop.xlane.xlu1 %758 }
 0x4d9   :  { %1253 = vrsqrt.f32 %v782_v46  ;;  %v775_v52 = vmul.f32 0.00390625, %v759_v51 }
 0x4db   :  { %v1250_v32 = vpop.eup %1249  ;;  %v783_v47 = vadd.f32 1e-05, %v775_v52 }
 0x4dc   :  { %v762_v58 = vpop.xlane.xlu0 %761  ;;  %v796_v59 = vmul.f32 %v1250_v32, %v68_v53 }
 0x4dd   :  { %1255 = vrsqrt.f32 %v783_v47  ;;  %v776_v5 = vmul.f32 0.00390625, %v762_v58 }
 0x4de   :  { %806 = vperm.xlu0 %1200, %v796_v59  }
 0x4df   :  { %v1252_v60 = vpop.eup %1251  ;;  %v784_v63 = vadd.f32 1e-05, %v776_v5 }
 0x4e0   :  { %v765_v0 = vpop.xlane.xlu1 %764  ;;  %v797_v1 = vmul.f32 %v1252_v60, %v69_v20 }
 0x4e1   :  { %1257 = vrsqrt.f32 %v784_v63  ;;  %v777_v7 = vmul.f32 0.00390625, %v765_v0 }
 0x4e2   :  { %811 = vperm.xlu1 %1199, %v797_v1  }
 0x4e3   :  { %v1254_v9 = vpop.eup %1253  ;;  %v785_v10 = vadd.f32 1e-05, %v777_v7 }
 0x4e4   :  { %v768_v11 = vpop.xlane.xlu0 %767  ;;  %v798_v49 = vmul.f32 %v1254_v9, %v70_v8 }
 0x4e5   :  { %1259 = vrsqrt.f32 %v785_v10  ;;  %v778_v26 = vmul.f32 0.00390625, %v768_v11 }
 0x4e6   :  { %816 = vperm.xlu1 %1199, %v798_v49  }
 0x4e7   :  { %v1256_v54 = vpop.eup %1255  ;;  %v786_v55 = vadd.f32 1e-05, %v778_v26 }
 0x4e8   :  { %v771_v18 = vpop.xlane.xlu1 %770  ;;  %v799_v21 = vmul.f32 %v1256_v54, %v71_v17 }
 0x4e9   :  { %1261 = vrsqrt.f32 %v786_v55  ;;  %v779_v22 = vmul.f32 0.00390625, %v771_v18 }
 0x4ea   :  { %821 = vperm.xlu0 %1200, %v799_v21  }
 0x4eb   :  { %v1258_v61 = vpop.eup %1257  ;;  %v787_v28 = vadd.f32 1e-05, %v779_v22 }
 0x4ec   :  { %v800_v29 = vmul.f32 %v1258_v61, %v72_v23  ;;  %v868_v45 = vpop.permute.xlu0 %867  ;;  %v863_v46 = vpop.permute.xlu1 %862 }
 0x4ed   :  { %1263 = vrsqrt.f32 %v787_v28 }
 0x4ee   :  { %826 = vperm.xlu1 %1199, %v800_v29  }
 0x4ef   :  { %v1260_v30 = vpop.eup %1259 }
 0x4f0   :  { %v801_v34 = vmul.f32 %v1260_v30, %v73_v33  ;;  %v878_v51 = vpop.permute.xlu0 %877  ;;  %v873_v52 = vpop.permute.xlu1 %872 }
 0x4f2   :  { %831 = vperm.xlu0 %1200, %v801_v34  }
 0x4f3   :  { %v1262_v6 = vpop.eup %1261 }
 0x4f4   :  { %v802_v35 = vmul.f32 %v1262_v6, %v74_v31  ;;  %v888_v53 = vpop.permute.xlu0 %887  ;;  %v883_v32 = vpop.permute.xlu1 %882 }
 0x4f6   :  { %836 = vperm.xlu1 %1199, %v802_v35  }
 0x4f7   :  { %v1264_v24 = vpop.eup %1263 }
 0x4f8   :  { %v803_v37 = vmul.f32 %v1264_v24, %v75_v16 }
 0x4fa   :  { %892 = vperm.xlu1 %1199, %v82_v36   ;;  %841 = vperm.xlu0 %1200, %v803_v37  }
 0x4fe   :  { %998 = vperm.xlu1 %1199, %v84_v38   ;;  %897 = vperm.xlu0 %1200, %v83_v13  }
 0x502   :  { %1008 = vperm.xlu1 %1199, %v86_v40   ;;  %1003 = vperm.xlu0 %1200, %v85_v41  }
 0x506   :  { %1013 = vperm.xlu0 %1200, %v87_v42  }
 0x55d   :  { %v807_v47 = vpop.permute.xlu0 %806 }
 0x55e   :  { %v844_v58 = vmul.f32 %v807_v47, %v1611_v39  ;;  %v845_v59 = vmul.f32 %v807_v47, %v1613_v12 }
 0x560   :  { %v900_v5 = vadd.f32 %v863_v46, %v844_v58  ;;  %v901_v20 = vadd.f32 %v863_v46, %v845_v59 }
 0x561   :  { %v812_v60 = vpop.permute.xlu1 %811 }
 0x562   :  { %v932_v63 = vmul.f32 0.70710677, %v900_v5  ;;  %v933_v0 = vmul.f32 0.70710677, %v901_v20  ;;  %v846_v1 = vmul.f32 %v812_v60, %v1619_v43  ;;  %v847_v7 = vmul.f32 %v812_v60, %v1621_v44 }
 0x563   :  { %v916_v24 = vmul.f32 0.5, %v900_v5 }
 0x564   :  { %v902_v8 = vadd.f32 %v868_v45, %v846_v1  ;;  %v903_v9 = vadd.f32 %v868_v45, %v847_v7  ;;  %1265 = verf.f32 %v932_v63  ;;  %v917_v45 = vmul.f32 0.5, %v901_v20 }
 0x565   :  { %v817_v10 = vpop.permute.xlu1 %816  ;;  %1267 = verf.f32 %v933_v0 }
 0x566   :  { %v848_v11 = vmul.f32 %v817_v10, %v1627_v56  ;;  %v849_v49 = vmul.f32 %v817_v10, %v1629_v57  ;;  %v934_v39 = vmul.f32 0.70710677, %v902_v8  ;;  %v935_v12 = vmul.f32 0.70710677, %v903_v9 }
 0x567   :  { %v918_v36 = vmul.f32 0.5, %v902_v8  ;;  %v919_v46 = vmul.f32 0.5, %v903_v9 }
 0x568   :  { %v1741_v26 = vadd.f32 %v873_v52, %v848_v11  ;;  %v1743_v17 = vadd.f32 %v873_v52, %v849_v49  ;;  %1269 = verf.f32 %v934_v39 }
 0x569   :  { %v822_v54 = vpop.permute.xlu0 %821  ;;  %1271 = verf.f32 %v935_v12 }
 0x56a   :  { %v936_v43 = vmul.f32 0.70710677, %v1741_v26  ;;  %v850_v44 = vmul.f32 %v822_v54, %v1635_v19  ;;  %v851_v55 = vmul.f32 %v822_v54, %v1637_v50  ;;  %v937_v56 = vmul.f32 0.70710677, %v1743_v17 }
 0x56c   :  { %v906_v18 = vadd.f32 %v878_v51, %v850_v44  ;;  %v1749_v57 = vadd.f32 %v878_v51, %v851_v55  ;;  %1273 = verf.f32 %v936_v43 }
 0x56d   :  { %v827_v21 = vpop.permute.xlu1 %826  ;;  %1275 = verf.f32 %v937_v56 }
 0x56e   :  { %v852_v22 = vmul.f32 %v827_v21, %v1643_v2  ;;  %v853_v23 = vmul.f32 %v827_v21, %v1645_v4  ;;  %v938_v61 = vmul.f32 0.70710677, %v906_v18  ;;  %v1266_v28 = vpop.eup %1265  ;;  %v939_v29 = vmul.f32 0.70710677, %v1749_v57 }
 0x56f   :  { %v1268_v50 = vpop.eup %1267  ;;  %v964_v2 = vadd.f32 1.0, %v1266_v28  ;;  %v922_v7 = vmul.f32 0.5, %v906_v18 }
 0x570   :  { %v1754_v33 = vadd.f32 %v883_v32, %v852_v22  ;;  %v1756_v19 = vadd.f32 %v883_v32, %v853_v23  ;;  %1277 = verf.f32 %v938_v61  ;;  %v965_v38 = vadd.f32 1.0, %v1268_v50 }
 0x571   :  { %v832_v30 = vpop.permute.xlu0 %831  ;;  %1279 = verf.f32 %v939_v29  ;;  %v980_v52 = vmul.f32 %v964_v2, %v916_v24 }
 0x572   :  { %v940_v34 = vmul.f32 0.70710677, %v1754_v33  ;;  %v1270_v31 = vpop.eup %1269  ;;  %v941_v4 = vmul.f32 0.70710677, %v1756_v19  ;;  %v854_v6 = vmul.f32 %v832_v30, %v1651_v14  ;;  %v855_v35 = vmul.f32 %v832_v30, %v1653_v48 }
 0x573   :  { %v1272_v16 = vpop.eup %1271  ;;  %v966_v37 = vadd.f32 1.0, %v1270_v31  ;;  %v981_v32 = vmul.f32 %v965_v38, %v917_v45 }
 0x574   :  { %1281 = verf.f32 %v940_v34  ;;  %v1762_v13 = vadd.f32 %v888_v53, %v854_v6  ;;  %v1764_v40 = vadd.f32 %v888_v53, %v855_v35  ;;  %v967_v42 = vadd.f32 1.0, %v1272_v16 }
 0x575   :  { %v837_v41 = vpop.permute.xlu1 %836  ;;  %v982_v51 = vmul.f32 %v966_v37, %v918_v36  ;;  %1283 = verf.f32 %v941_v4  ;;  %v925_v16 = vmul.f32 0.5, %v1756_v19 }
 0x576   :  { %v942_v14 = vmul.f32 0.70710677, %v1762_v13  ;;  %v943_v48 = vmul.f32 0.70710677, %v1764_v40  ;;  %v983_v47 = vmul.f32 %v967_v42, %v919_v46  ;;  %v1274_v58 = vpop.eup %1273  ;;  %v856_v59 = vmul.f32 %v837_v41, %v1659_v27 }
 0x577   :  { %v857_v53 = vmul.f32 %v837_v41, %v1661_v15  ;;  %v1175_v63 = vpack.c.bf16 %v982_v51, %v980_v52  ;;  %v1276_v20 = vpop.eup %1275  ;;  %v968_v11 = vadd.f32 1.0, %v1274_v58  ;;  %v920_v15 = vmul.f32 0.5, %v1741_v26 }
 0x578   :  { %1285 = verf.f32 %v942_v14  ;;  %v1173_v0 = vpack.c.bf16 %v983_v47, %v981_v32  ;;  %v969_v44 = vadd.f32 1.0, %v1276_v20  ;;  %v927_v24 = vmul.f32 0.5, %v1764_v40 }
 0x579   :  { %v842_v5 = vpop.permute.xlu0 %841  ;;  %v893_v60 = vpop.permute.xlu1 %892  ;;  %1287 = verf.f32 %v943_v48  ;;  %v984_v26 = vmul.f32 %v968_v11, %v920_v15 }
 0x57a   :  { %v1278_v1 = vpop.eup %1277  ;;  %v1770_v8 = vadd.f32 %v893_v60, %v856_v59  ;;  %v1772_v9 = vadd.f32 %v893_v60, %v857_v53  ;;  %v858_v39 = vmul.f32 %v842_v5, %v1667_v62  ;;  %v859_v27 = vmul.f32 %v842_v5, %v1669_v25  ;;  %1174 = vmatprep.subr.bf16.mxu0 %v1173_v0 }
 0x57b   :  { %v1280_v10 = vpop.eup %1279  ;;  %v970_v49 = vadd.f32 1.0, %v1278_v1  ;;  %1189 = vmatprep.subr.bf16.mxu1 %v1173_v0  ;;  %1176 = vmatpush1.bf16.msra.mxu0 %v1175_v63  ;;  %v921_v62 = vmul.f32 0.5, %v1743_v17  ;;  %v923_v25 = vmul.f32 0.5, %v1749_v57  ;;  %v924_v17 = vmul.f32 0.5, %v1754_v33  ;;  %v48_v1 = vld [vmem:[%s1837_s7] sm:$0xff] }
 0x57c   :  { %v944_v12 = vmul.f32 0.70710677, %v1770_v8  ;;  %v945_v54 = vmul.f32 0.70710677, %v1772_v9  ;;  %1193 = vmatpush1.bf16.msra.mxu1 %v1175_v63  ;;  %v971_v21 = vadd.f32 1.0, %v1280_v10  ;;  %v926_v57 = vmul.f32 0.5, %v1762_v13 }
 0x57d   :  { %v898_v43 = vpop.permute.xlu0 %897  ;;  %v986_v55 = vmul.f32 %v970_v49, %v922_v7  ;;  %v985_v29 = vmul.f32 %v969_v44, %v921_v62  ;;  %v928_v14 = vmul.f32 0.5, %v1770_v8  ;;  %v929_v47 = vmul.f32 0.5, %v1772_v9  ;;  %v51_v7 = vld [vmem:[%s1837_s7 + $0x18] sm:$0xff]  ;;  %v49_v8 = vld [vmem:[%s1837_s7 + $0x8] sm:$0xff]  ;;  %v50_v9 = vld [vmem:[%s1837_s7 + $0x10] sm:$0xff]  ;;  %v999_v11 = vpop.permute.xlu1 %998 }
 0x57e   :  { %v914_v56 = vadd.f32 %v898_v43, %v858_v39  ;;  %v915_v18 = vadd.f32 %v898_v43, %v859_v27  ;;  %v1282_v22 = vpop.eup %1281  ;;  %1289 = verf.f32 %v944_v12  ;;  %v987_v50 = vmul.f32 %v971_v21, %v923_v25 }
 0x57f   :  { %v1284_v23 = vpop.eup %1283  ;;  %1291 = verf.f32 %v945_v54  ;;  %v972_v30 = vadd.f32 1.0, %v1282_v22  ;;  %v1179_v34 = vpack.c.bf16 %v986_v55, %v984_v26 }
 0x580   :  { %v946_v61 = vmul.f32 0.70710677, %v914_v56  ;;  %v947_v28 = vmul.f32 0.70710677, %v915_v18  ;;  %v1177_v2 = vpack.c.bf16 %v987_v50, %v985_v29  ;;  %v973_v4 = vadd.f32 1.0, %v1284_v23 }
 0x581   :  { %v988_v37 = vmul.f32 %v972_v30, %v924_v17  ;;  %v930_v48 = vmul.f32 0.5, %v914_v56  ;;  %v931_v58 = vmul.f32 0.5, %v915_v18  ;;  %v1004_v10 = vpop.permute.xlu0 %1003  ;;  %v1009_v22 = vpop.permute.xlu1 %1008 }
 0x582   :  { %1293 = verf.f32 %v946_v61  ;;  %v1286_v31 = vpop.eup %1285  ;;  %1178 = vmatprep.subr.bf16.mxu0 %v1177_v2  ;;  %1190 = vmatprep.subr.bf16.mxu1 %v1177_v2  ;;  %v989_v41 = vmul.f32 %v973_v4, %v925_v16 }
 0x583   :  { %1295 = verf.f32 %v947_v28  ;;  %v1288_v6 = vpop.eup %1287  ;;  %v974_v35 = vadd.f32 1.0, %v1286_v31  ;;  %1180 = vmatpush1.bf16.msra.mxu0 %v1179_v34  ;;  %1194 = vmatpush1.bf16.msra.mxu1 %v1179_v34 }
 0x584   :  { %v975_v36 = vadd.f32 1.0, %v1288_v6 }
 0x585   :  { %v990_v38 = vmul.f32 %v974_v35, %v926_v57  ;;  %v1014_v49 = vpop.permute.xlu0 %1013 }
 0x586   :  { %v991_v42 = vmul.f32 %v975_v36, %v927_v24 }
 0x587   :  { %v1183_v45 = vpack.c.bf16 %v990_v38, %v988_v37 }
 0x588   :  { %v1290_v46 = vpop.eup %1289  ;;  %v1181_v51 = vpack.c.bf16 %v991_v42, %v989_v41 }
 0x589   :  { %v1292_v33 = vpop.eup %1291  ;;  %v976_v52 = vadd.f32 1.0, %v1290_v46 }
 0x58a   :  { %1182 = vmatprep.subr.bf16.mxu0 %v1181_v51  ;;  %1191 = vmatprep.subr.bf16.mxu1 %v1181_v51  ;;  %v977_v19 = vadd.f32 1.0, %v1292_v33 }
 0x58b   :  { %1184 = vmatpush1.bf16.msra.mxu0 %v1183_v45  ;;  %1195 = vmatpush1.bf16.msra.mxu1 %v1183_v45  ;;  %v992_v53 = vmul.f32 %v976_v52, %v928_v14 }
 0x58c   :  { %v1294_v13 = vpop.eup %1293  ;;  %v993_v60 = vmul.f32 %v977_v19, %v929_v47 }
 0x58d   :  { %v1296_v40 = vpop.eup %1295  ;;  %v978_v32 = vadd.f32 1.0, %v1294_v13 }
 0x58e   :  { %v979_v59 = vadd.f32 1.0, %v1296_v40 }
 0x58f   :  { %v994_v5 = vmul.f32 %v978_v32, %v930_v48 }
 0x590   :  { %v995_v63 = vmul.f32 %v979_v59, %v931_v58 }
 0x591   :  { %v1187_v20 = vpack.c.bf16 %v994_v5, %v992_v53 }
 0x592   :  { %v1185_v0 = vpack.c.bf16 %v995_v63, %v993_v60 }
 0x594   :  { %1186 = vmatprep.subr.bf16.mxu0 %v1185_v0  ;;  %1192 = vmatprep.subr.bf16.mxu1 %v1185_v0 }
 0x595   :  { %1188 = vmatpush1.bf16.msra.mxu0 %v1187_v20  ;;  %1196 = vmatpush1.bf16.msra.mxu1 %v1187_v20 }
 0x598   :  { %1145 = vmatmul.mubr.msk.f32.vlgmr.msra.gmra.mrb[16].mxu0 %vm546_vm1, %v48_v1  ;;  %1148 = vmatmul.mubr.msk.f32.vlgmr.msra.gmra.mrb[16].mxu1 %vm546_vm1, %v51_v7 }
 0x599   :  { %1098 = vmatprep.mubr.f32.mxu0 %v1297_v3 }
 0x59c   :  { %1146 = vmatmul.mubr.msk.f32.gmra.mrb[18].mxu0 %vm546_vm1, %v49_v8 }
 0x59d   :  { %1104 = vmatprep.mubr.f32.mxu0 %v1297_v3 }
 0x5a0   :  { %1147 = vmatmul.mubr.msk.f32.gmra.mrb[20].mxu0 %vm546_vm1, %v50_v9 }
 0x66b   :  { %v1094_v39 = vpop.f32.mrb[16].mxu0  ;;  %v1112_v27 = vpop.f32.mrb[16].mxu1 }
 0x66c   :  { %v1095_v15 = vadd.f32 %v1094_v39, %v999_v11  ;;  %v1113_v12 = vadd.f32 %v1112_v27, %v1014_v49  ;;  %v1096_v54 = vpop.f32.mrb[17].mxu0  ;;  %v1114_v43 = vpop.f32.mrb[17].mxu1 }
 0x66d   :  { %v1097_v44 = vadd.f32 %v1096_v54, %v999_v11  ;;  %v1115_v55 = vadd.f32 %v1114_v43, %v1014_v49 }
 0x66e   :  { %1117 = vst [vmem:[%s1838_s9] sm:$0xff] %v1095_v15  ;;  %1123 = vst [vmem:[%s1838_s9 + $0x30] sm:$0xff] %v1113_v12 }
 0x66f   :  { %1118 = vst [vmem:[%s1838_s9 + $0x8] sm:$0xff] %v1097_v44  ;;  %1124 = vst [vmem:[%s1838_s9 + $0x38] sm:$0xff] %v1115_v55  ;;  %v1100_v3 = vpop.f32.mrb[18].mxu0 }
 0x670   :  { %v1101_v56 = vadd.f32 %v1100_v3, %v1004_v10  ;;  %v1102_v18 = vpop.f32.mrb[19].mxu0 }
 0x671   :  { %v1103_v21 = vadd.f32 %v1102_v18, %v1004_v10 }
 0x672   :  { %1119 = vst [vmem:[%s1838_s9 + $0x10] sm:$0xff] %v1101_v56 }
 0x673   :  { %1120 = vst [vmem:[%s1838_s9 + $0x18] sm:$0xff] %v1103_v21  ;;  %v1106_v62 = vpop.f32.mrb[20].mxu0 }
 0x674   :  { %v1107_v25 = vadd.f32 %v1106_v62, %v1009_v22  ;;  %v1108_v23 = vpop.f32.mrb[21].mxu0 }
 0x675   :  { %v1109_v26 = vadd.f32 %v1108_v23, %v1009_v22 }
 0x676   :  { %1121 = vst [vmem:[%s1838_s9 + $0x20] sm:$0xff] %v1107_v25 }
 0x677   :  { %1122 = vst [vmem:[%s1838_s9 + $0x28] sm:$0xff] %v1109_v26 }

</bundles_post_ra>
